<compile_context>
chip_gen: v7x
topology: tpu7x:2x2x1
jax: 0.10.0
libtpu: 0.0.40
codegen_flags: <defaults>
</compile_context>

<pallas_src>
import math

import jax
import jax.numpy as jnp
from jax import lax
from jax.experimental import pallas as pl
from jax.experimental.pallas import tpu as pltpu

OUT_PAD = 128  # lane-dense padded readout width (score is column 0)


def _leaky_relu(x):
    return jnp.where(x > 0, x, 0.01 * x)  # torch.nn.LeakyReLU default slope


def _pack_rows(entries, dtype, *, align, lanes=128):
    """Pack 2-D arrays into one (rows, lanes) slab, each at an `align`-row offset."""
    offs, row = [], 0
    for a in entries:
        offs.append(row)
        row += -(-a.shape[0] // align) * align
    row = max(row, align)
    slab = jnp.zeros((row, lanes), dtype)
    for a, o in zip(entries, offs):
        slab = slab.at[o:o + a.shape[0], :a.shape[1]].set(a.astype(dtype))
    return slab, offs


# ---------------------------------------------------------------------------
# Pallas kernel: single invocation, full reversible-Heun integration inside.
# ---------------------------------------------------------------------------
def make_discriminator_kernel(*, batch, hidden, ch, mlp, num_layers, dt, n_steps,
                              w_specs, b_specs):
    L = num_layers
    CH = ch * hidden

    def kernel(wslab_ref, bslab_ref, tvec_ref, step_ref, out_ref):
        f32 = jnp.float32
        bf16 = jnp.bfloat16

        def w(name):
            r0, nr, nc = w_specs[name]
            return wslab_ref[r0:r0 + nr, :nc]          # bf16 weight, loaded at use

        def b(name):
            r0, nr, nc = b_specs[name]
            return bslab_ref[r0:r0 + nr, :nc]          # (1, nc) f32 bias

        def mm(x, wmat):
            # single-pass bf16 MXU matmul with f32 accumulation
            return jnp.dot(x.astype(bf16), wmat, preferred_element_type=f32)

        def initial_mlp(x):
            for i in range(L + 1):
                x = mm(x, w(f"init{i}")) + b(f"init{i}")
                if i < L:
                    x = _leaky_relu(x)
            return x

        def drift(tb, h, dy):
            # func MLP first layer: concat([t, h]) @ W + b == (t*W_t + b) + h @ W_h,
            # with the time term `tb` precomputed on the host in f32.
            x = _leaky_relu(tb + mm(h, w("func_h")))
            for i in range(1, L):
                x = _leaky_relu(mm(x, w(f"func{i}")) + b(f"func{i}"))
            # last layer outputs permuted to channel-major: flat[:, c*hidden + j]
            flat = jnp.tanh(mm(x, w("func_last")) + b("func_last"))   # (batch, CH)
            prod = flat * dy                 # dy pre-expanded channel-major (batch, CH)
            acc = prod[:, 0:hidden]
            for c in range(1, ch):
                acc = acc + prod[:, c * hidden:(c + 1) * hidden]
            return acc                       # (batch, hidden) = f(t,h) . dY/dt

        dt_f = jnp.float32(dt)

        # ---- initial state ------------------------------------------------
        y0 = step_ref[0][:, 0:ch]            # Y(0)
        h0 = initial_mlp(y0)
        f0 = drift(tvec_ref[0], h0, step_ref[1])

        # ---- reversible-Heun integration (zero diffusion -> drift only) ----
        def step(n, carry):
            y, z, f = carry
            dy = step_ref[n + 2]             # dY/dt at step end-time t_{n+1}
            tb = tvec_ref[n + 1]             # t_{n+1}*W_time + b0 (replicated rows)
            z1 = 2.0 * y - z + f * dt_f
            f1 = drift(tb, z1, dy)
            y1 = y + 0.5 * (f + f1) * dt_f
            return (y1, z1, f1)

        unroll = True if n_steps <= 32 else 8
        y_final, _, _ = lax.fori_loop(0, n_steps, step, (h0, h0, f0), unroll=unroll)

        # ---- lane-padded readout: single unmasked, lane-dense store --------
        out_ref[...] = mm(y_final, w("readout")) + b("readout")

    return kernel


# ---------------------------------------------------------------------------
# Parameter init (deterministic, synthetic) — matches the PyTorch module shapes.
# MLP(in, out, mlp_size, num_layers): Linear(in,mlp)+LeakyReLU,
# (num_layers-1)*(Linear(mlp,mlp)+LeakyReLU), Linear(mlp,out) [+ tanh for func].
# Weights stored pre-transposed as (in, out); biases as (1, out).
# ---------------------------------------------------------------------------
def init_params(key, *, data_size, hidden, mlp, num_layers):
    ch = 1 + data_size
    L = num_layers
    keys = iter(jax.random.split(key, 8 * (L + 2)))

    def linear(in_, out_):
        w = jax.random.normal(next(keys), (in_, out_), jnp.float32) / jnp.sqrt(jnp.float32(in_))
        b = 0.1 * jax.random.normal(next(keys), (1, out_), jnp.float32)
        return w, b

    init_sizes = [ch] + [mlp] * L + [hidden]
    initial = []
    for i in range(L + 1):
        initial += list(linear(init_sizes[i], init_sizes[i + 1]))

    func_sizes = [1 + hidden] + [mlp] * L + [hidden * ch]
    func = []
    for i in range(L + 1):
        func += list(linear(func_sizes[i], func_sizes[i + 1]))

    readout = list(linear(hidden, 1))
    return initial, func, readout


# ---------------------------------------------------------------------------
# One-time build: pack weight/bias slabs, precompute time terms, create the
# pallas_call and a jitted per-call wrapper (dY gather/expand + kernel launch).
# ---------------------------------------------------------------------------
def build_forward(initial_p, func_p, readout_p, *, data_size, hidden_size, mlp_size,
                  num_layers, d_dt, batch, seq):
    L = num_layers
    ch = 1 + data_size
    CH = ch * hidden_size
    T = float(seq - 1)                       # Y.interval = (0, seq-1)
    n_steps = int(round(T / d_dt))
    assert abs(n_steps * d_dt - T) < 1e-9, "dt must evenly divide the integration interval"
    assert max(mlp_size, CH, hidden_size, ch) <= 128, "single-lane-tile packing assumed"

    # ---- split / permute func params -------------------------------------
    w_f0, b_f0 = func_p[0], func_p[1]
    w_time = w_f0[:1, :]                     # time row of the first func linear
    w_fh = w_f0[1:, :]                       # hidden rows of the first func linear
    w_fl, b_fl = func_p[-2], func_p[-1]
    # last linear: (hidden, ch) row-major outputs  ->  channel-major (c, h) lanes,
    # so the (B, hidden, ch) view becomes ch static lane slices inside the kernel.
    w_fl_cm = w_fl.reshape(mlp_size, hidden_size, ch).transpose(0, 2, 1).reshape(mlp_size, CH)
    b_fl_cm = b_fl.reshape(1, hidden_size, ch).transpose(0, 2, 1).reshape(1, CH)

    ro_w, ro_b = readout_p
    ro_w_pad = jnp.zeros((hidden_size, OUT_PAD), jnp.float32).at[:, :1].set(ro_w)
    ro_b_pad = jnp.zeros((1, OUT_PAD), jnp.float32).at[:, :1].set(ro_b)

    # ---- weight slab (bf16, one DMA, 16-row aligned entries) --------------
    w_entries, w_names = [], []
    for i in range(L + 1):
        w_entries.append(initial_p[2 * i]); w_names.append(f"init{i}")
    w_entries.append(w_fh); w_names.append("func_h")
    for i in range(1, L):
        w_entries.append(func_p[2 * i]); w_names.append(f"func{i}")
    w_entries.append(w_fl_cm); w_names.append("func_last")
    w_entries.append(ro_w_pad); w_names.append("readout")
    wslab, w_offs = _pack_rows(w_entries, jnp.bfloat16, align=16)
    w_specs = {n: (o, a.shape[0], a.shape[1]) for n, o, a in zip(w_names, w_offs, w_entries)}

    # ---- bias slab (f32, one DMA, 8-row aligned entries) -------------------
    b_entries, b_names = [], []
    for i in range(L + 1):
        b_entries.append(initial_p[2 * i + 1]); b_names.append(f"init{i}")
    for i in range(1, L):
        b_entries.append(func_p[2 * i + 1]); b_names.append(f"func{i}")
    b_entries.append(b_fl_cm); b_names.append("func_last")
    b_entries.append(ro_b_pad); b_names.append("readout")
    bslab, b_offs = _pack_rows(b_entries, jnp.float32, align=8)
    b_specs = {n: (o, a.shape[0], a.shape[1]) for n, o, a in zip(b_names, b_offs, b_entries)}

    # ---- precomputed func first-layer time term:  t_s*W_time + b0 ----------
    ts = jnp.arange(n_steps + 1, dtype=jnp.float32) * jnp.float32(d_dt)   # t_0..t_n
    tvec = ts[:, None] * w_time + b_f0                                    # (n_steps+1, mlp)
    tvec = jnp.asarray(jnp.broadcast_to(tvec[:, None, :],
                                        (n_steps + 1, batch, mlp_size)), jnp.float32)

    # linear-interpolation segment used at each evaluation time t_s
    seg = [min(int(math.floor(s * d_dt)), seq - 2) for s in range(n_steps + 1)]
    seg = jnp.asarray(seg, jnp.int32)

    kernel = make_discriminator_kernel(
        batch=batch, hidden=hidden_size, ch=ch, mlp=mlp_size, num_layers=L,
        dt=d_dt, n_steps=n_steps, w_specs=w_specs, b_specs=b_specs)

    vmem = pl.BlockSpec(memory_space=pltpu.MemorySpace.VMEM)   # whole array, resident
    pallas_fn = pl.pallas_call(
        kernel,
        out_shape=jax.ShapeDtypeStruct((batch, OUT_PAD), jnp.float32),
        in_specs=[vmem, vmem, vmem, vmem],
        out_specs=vmem,
    )

    @jax.jit
    def forward(ys, wslab, bslab, tvec):
        # per-call host-side prep: Y(0) plus the per-step dY/dt of the linear
        # interpolation, pre-expanded to channel-major lanes (…, ch*hidden).
        dyseg = ys[:, 1:, :] - ys[:, :-1, :]                    # (batch, seq-1, ch)
        dy_sel = jnp.transpose(dyseg, (1, 0, 2))[seg]           # (n_steps+1, batch, ch)
        dy_exp = jnp.repeat(dy_sel, hidden_size, axis=-1)       # (n_steps+1, batch, CH)
        y0 = ys[:, 0, :]
        y0_pad = jnp.zeros((1, batch, CH), jnp.float32).at[0, :, :ch].set(y0)
        per_step = jnp.concatenate([y0_pad, dy_exp.astype(jnp.float32)], axis=0)
        out = pallas_fn(wslab, bslab, tvec, per_step)
        return out[:, :1]

    return forward, (wslab, bslab, tvec)


# ---------------------------------------------------------------------------
# Pure-JAX reference (natural PyTorch weight layout: concat / view / einsum).
# With mxu_bf16=True it follows the kernel's MXU dtype policy (bf16 matmul
# operands, f32 accumulation, f32 time term and elementwise math) so the check
# isolates kernel-implementation correctness from the deliberate bf16 choice.
# ---------------------------------------------------------------------------
def reference_forward(ys, initial_params, func_params, readout_params, *,
                      hidden, num_layers, dt, mxu_bf16=False):
    batch, seq, ch = ys.shape
    T = float(seq - 1)
    n_steps = int(round(T / dt))
    cast = (lambda a: a.astype(jnp.bfloat16)) if mxu_bf16 else (lambda a: a)

    def dot(a, wm):
        return jnp.dot(cast(a), cast(wm), preferred_element_type=jnp.float32)

    def initial(x):
        p = initial_params
        nlin = len(p) // 2
        for i in range(nlin):
            x = dot(x, p[2 * i]) + p[2 * i + 1]
            if i < nlin - 1:
                x = _leaky_relu(x)
        return x

    def func(t, h):
        # concat([t, h]) @ W + b  ==  t*W[0] + h @ W[1:] + b   (time term kept f32)
        p = func_params
        w0, b0 = p[0], p[1]
        x = _leaky_relu(t * w0[:1, :] + dot(h, w0[1:, :]) + b0)
        nlin = len(p) // 2
        for i in range(1, nlin - 1):
            x = _leaky_relu(dot(x, p[2 * i]) + p[2 * i + 1])
        x = jnp.tanh(dot(x, p[-2]) + p[-1])
        return x.reshape(batch, hidden, ch)

    dyseg = ys[:, 1:, :] - ys[:, :-1, :]
    h0 = initial(ys[:, 0, :])
    y, z = h0, h0
    f = jnp.einsum('bhc,bc->bh', func(0.0, y), dyseg[:, 0])
    for n in range(n_steps):
        t1 = (n + 1) * T / n_steps
        segi = min(int(math.floor(t1)), seq - 2)
        dy = dyseg[:, segi]
        z1 = 2.0 * y - z + f * dt
        f1 = jnp.einsum('bhc,bc->bh', func(float(t1), z1), dy)
        y = y + 0.5 * (f + f1) * dt
        z, f = z1, f1
    return dot(y, readout_params[0]) + readout_params[1]


if __name__ == "__main__":
    # small, module-consistent sizes
    data_size = 3
    hidden_size = 16
    mlp_size = 32
    num_layers = 2
    d_dt = 0.5
    batch = 2
    seq = 5                      # integration interval [0, 4] -> 8 steps of dt=0.5

    key = jax.random.PRNGKey(0)
    k_params, k_data = jax.random.split(key)
    initial_p, func_p, readout_p = init_params(
        k_params, data_size=data_size, hidden=hidden_size, mlp=mlp_size,
        num_layers=num_layers)

    # ys_coeffs: time channel + data channels (as in the SDE-GAN discriminator input)
    ts = jnp.broadcast_to(jnp.arange(seq, dtype=jnp.float32)[None, :, None], (batch, seq, 1))
    data = jax.random.normal(k_data, (batch, seq, data_size), jnp.float32)
    ys_coeffs = jnp.concatenate([ts, data], axis=2)          # (batch, seq, 1 + data_size)

    forward, packed = build_forward(
        initial_p, func_p, readout_p, data_size=data_size, hidden_size=hidden_size,
        mlp_size=mlp_size, num_layers=num_layers, d_dt=d_dt, batch=batch, seq=seq)

    score = forward(ys_coeffs, *packed)
    score = jax.block_until_ready(score)

    # reference that emulates the kernel's mixed-precision policy (bf16 MXU
    # operands, f32 accumulate / elementwise) in the natural PyTorch layout.
    ref = reference_forward(ys_coeffs, initial_p, func_p, readout_p,
                            hidden=hidden_size, num_layers=num_layers, dt=d_dt,
                            mxu_bf16=True)

    assert score.shape == (batch, 1)
    assert jnp.allclose(score, ref, rtol=2e-2, atol=2e-2), (score, ref)
    print("KERNEL_OK")
</pallas_src>

<mosaic_0001>
module attributes {stable_mosaic.version = 11 : i64} {
  func.func @kernel(%arg0: memref<176x128xbf16, #tpu.memory_space<vmem>>, %arg1: memref<48x128xf32, #tpu.memory_space<vmem>>, %arg2: memref<9x2x32xf32, #tpu.memory_space<vmem>>, %arg3: memref<10x2x64xf32, #tpu.memory_space<vmem>>, %arg4: memref<2x128xf32, #tpu.memory_space<vmem>>) attributes {dimension_semantics = [], scalar_prefetch = 0 : i64, scratch_operands = 0 : i64, tpu.core_type = #tpu.core_type<tc>} {
    %c0 = arith.constant 0 : index
    %c0_0 = arith.constant 0 : index
    %c0_1 = arith.constant 0 : index
    %0 = vector.load %arg3[%c0, %c0_0, %c0_1] : memref<10x2x64xf32, #tpu.memory_space<vmem>>, vector<1x2x64xf32>
    %1 = vector.shape_cast %0 : vector<1x2x64xf32> to vector<2x64xf32>
    %2 = vector.extract_strided_slice %1 {offsets = [0, 0], sizes = [2, 4], strides = [1, 1]} : vector<2x64xf32> to vector<2x4xf32>
    %c0_2 = arith.constant 0 : index
    %c0_3 = arith.constant 0 : index
    %3 = vector.load %arg0[%c0_2, %c0_3] : memref<176x128xbf16, #tpu.memory_space<vmem>>, vector<4x32xbf16>
    %4 = arith.truncf %2 : vector<2x4xf32> to vector<2x4xbf16>
    %cst = arith.constant dense<0.000000e+00> : vector<2x32xf32>
    %5 = tpu.matmul %4, %3, %cst {dimension_numbers = #tpu.dot_dimension_numbers<[1], [0], [0], [1], [0, 0, 1, 1], [], []>} : vector<2x4xbf16>, vector<4x32xbf16>, vector<2x32xf32> -> vector<2x32xf32>
    %c0_4 = arith.constant 0 : index
    %c0_5 = arith.constant 0 : index
    %6 = vector.load %arg1[%c0_4, %c0_5] : memref<48x128xf32, #tpu.memory_space<vmem>>, vector<1x32xf32>
    %7 = vector.broadcast %6 : vector<1x32xf32> to vector<2x32xf32>
    %8 = arith.addf %5, %7 : vector<2x32xf32>
    %cst_6 = arith.constant 0.000000e+00 : f32
    %9 = vector.broadcast %cst_6 : f32 to vector<2x32xf32>
    %10 = arith.cmpf ogt, %8, %9 : vector<2x32xf32>
    %cst_7 = arith.constant 0.00999999977 : f32
    %11 = vector.broadcast %cst_7 : f32 to vector<2x32xf32>
    %12 = arith.mulf %11, %8 : vector<2x32xf32>
    %13 = arith.select %10, %8, %12 : vector<2x32xi1>, vector<2x32xf32>
    %c16 = arith.constant 16 : index
    %c0_8 = arith.constant 0 : index
    %14 = vector.load %arg0[%c16, %c0_8] : memref<176x128xbf16, #tpu.memory_space<vmem>>, vector<32x32xbf16>
    %15 = arith.truncf %13 : vector<2x32xf32> to vector<2x32xbf16>
    %cst_9 = arith.constant dense<0.000000e+00> : vector<2x32xf32>
    %16 = tpu.matmul %15, %14, %cst_9 {dimension_numbers = #tpu.dot_dimension_numbers<[1], [0], [0], [1], [0, 0, 1, 1], [], []>} : vector<2x32xbf16>, vector<32x32xbf16>, vector<2x32xf32> -> vector<2x32xf32>
    %c8 = arith.constant 8 : index
    %c0_10 = arith.constant 0 : index
    %17 = vector.load %arg1[%c8, %c0_10] : memref<48x128xf32, #tpu.memory_space<vmem>>, vector<1x32xf32>
    %18 = vector.broadcast %17 : vector<1x32xf32> to vector<2x32xf32>
    %19 = arith.addf %16, %18 : vector<2x32xf32>
    %cst_11 = arith.constant 0.000000e+00 : f32
    %20 = vector.broadcast %cst_11 : f32 to vector<2x32xf32>
    %21 = arith.cmpf ogt, %19, %20 : vector<2x32xf32>
    %cst_12 = arith.constant 0.00999999977 : f32
    %22 = vector.broadcast %cst_12 : f32 to vector<2x32xf32>
    %23 = arith.mulf %22, %19 : vector<2x32xf32>
    %24 = arith.select %21, %19, %23 : vector<2x32xi1>, vector<2x32xf32>
    %c48 = arith.constant 48 : index
    %c0_13 = arith.constant 0 : index
    %25 = vector.load %arg0[%c48, %c0_13] : memref<176x128xbf16, #tpu.memory_space<vmem>>, vector<32x16xbf16>
    %26 = arith.truncf %24 : vector<2x32xf32> to vector<2x32xbf16>
    %cst_14 = arith.constant dense<0.000000e+00> : vector<2x16xf32>
    %27 = tpu.matmul %26, %25, %cst_14 {dimension_numbers = #tpu.dot_dimension_numbers<[1], [0], [0], [1], [0, 0, 1, 1], [], []>} : vector<2x32xbf16>, vector<32x16xbf16>, vector<2x16xf32> -> vector<2x16xf32>
    %c16_15 = arith.constant 16 : index
    %c0_16 = arith.constant 0 : index
    %28 = vector.load %arg1[%c16_15, %c0_16] : memref<48x128xf32, #tpu.memory_space<vmem>>, vector<1x16xf32>
    %29 = vector.broadcast %28 : vector<1x16xf32> to vector<2x16xf32>
    %30 = arith.addf %27, %29 : vector<2x16xf32>
    %c0_17 = arith.constant 0 : index
    %c0_18 = arith.constant 0 : index
    %c0_19 = arith.constant 0 : index
    %31 = vector.load %arg2[%c0_17, %c0_18, %c0_19] : memref<9x2x32xf32, #tpu.memory_space<vmem>>, vector<1x2x32xf32>
    %32 = vector.shape_cast %31 : vector<1x2x32xf32> to vector<2x32xf32>
    %c1 = arith.constant 1 : index
    %c0_20 = arith.constant 0 : index
    %c0_21 = arith.constant 0 : index
    %33 = vector.load %arg3[%c1, %c0_20, %c0_21] : memref<10x2x64xf32, #tpu.memory_space<vmem>>, vector<1x2x64xf32>
    %34 = vector.shape_cast %33 : vector<1x2x64xf32> to vector<2x64xf32>
    %c80 = arith.constant 80 : index
    %c0_22 = arith.constant 0 : index
    %35 = vector.load %arg0[%c80, %c0_22] : memref<176x128xbf16, #tpu.memory_space<vmem>>, vector<16x32xbf16>
    %36 = arith.truncf %30 : vector<2x16xf32> to vector<2x16xbf16>
    %cst_23 = arith.constant dense<0.000000e+00> : vector<2x32xf32>
    %37 = tpu.matmul %36, %35, %cst_23 {dimension_numbers = #tpu.dot_dimension_numbers<[1], [0], [0], [1], [0, 0, 1, 1], [], []>} : vector<2x16xbf16>, vector<16x32xbf16>, vector<2x32xf32> -> vector<2x32xf32>
    %38 = arith.addf %32, %37 : vector<2x32xf32>
    %cst_24 = arith.constant 0.000000e+00 : f32
    %39 = vector.broadcast %cst_24 : f32 to vector<2x32xf32>
    %40 = arith.cmpf ogt, %38, %39 : vector<2x32xf32>
    %cst_25 = arith.constant 0.00999999977 : f32
    %41 = vector.broadcast %cst_25 : f32 to vector<2x32xf32>
    %42 = arith.mulf %41, %38 : vector<2x32xf32>
    %43 = arith.select %40, %38, %42 : vector<2x32xi1>, vector<2x32xf32>
    %c96 = arith.constant 96 : index
    %c0_26 = arith.constant 0 : index
    %44 = vector.load %arg0[%c96, %c0_26] : memref<176x128xbf16, #tpu.memory_space<vmem>>, vector<32x32xbf16>
    %45 = arith.truncf %43 : vector<2x32xf32> to vector<2x32xbf16>
    %cst_27 = arith.constant dense<0.000000e+00> : vector<2x32xf32>
    %46 = tpu.matmul %45, %44, %cst_27 {dimension_numbers = #tpu.dot_dimension_numbers<[1], [0], [0], [1], [0, 0, 1, 1], [], []>} : vector<2x32xbf16>, vector<32x32xbf16>, vector<2x32xf32> -> vector<2x32xf32>
    %c24 = arith.constant 24 : index
    %c0_28 = arith.constant 0 : index
    %47 = vector.load %arg1[%c24, %c0_28] : memref<48x128xf32, #tpu.memory_space<vmem>>, vector<1x32xf32>
    %48 = vector.broadcast %47 : vector<1x32xf32> to vector<2x32xf32>
    %49 = arith.addf %46, %48 : vector<2x32xf32>
    %cst_29 = arith.constant 0.000000e+00 : f32
    %50 = vector.broadcast %cst_29 : f32 to vector<2x32xf32>
    %51 = arith.cmpf ogt, %49, %50 : vector<2x32xf32>
    %cst_30 = arith.constant 0.00999999977 : f32
    %52 = vector.broadcast %cst_30 : f32 to vector<2x32xf32>
    %53 = arith.mulf %52, %49 : vector<2x32xf32>
    %54 = arith.select %51, %49, %53 : vector<2x32xi1>, vector<2x32xf32>
    %c128 = arith.constant 128 : index
    %c0_31 = arith.constant 0 : index
    %55 = vector.load %arg0[%c128, %c0_31] : memref<176x128xbf16, #tpu.memory_space<vmem>>, vector<32x64xbf16>
    %56 = arith.truncf %54 : vector<2x32xf32> to vector<2x32xbf16>
    %cst_32 = arith.constant dense<0.000000e+00> : vector<2x64xf32>
    %57 = tpu.matmul %56, %55, %cst_32 {dimension_numbers = #tpu.dot_dimension_numbers<[1], [0], [0], [1], [0, 0, 1, 1], [], []>} : vector<2x32xbf16>, vector<32x64xbf16>, vector<2x64xf32> -> vector<2x64xf32>
    %c32 = arith.constant 32 : index
    %c0_33 = arith.constant 0 : index
    %58 = vector.load %arg1[%c32, %c0_33] : memref<48x128xf32, #tpu.memory_space<vmem>>, vector<1x64xf32>
    %59 = vector.broadcast %58 : vector<1x64xf32> to vector<2x64xf32>
    %60 = arith.addf %57, %59 : vector<2x64xf32>
    %61 = math.tanh %60 : vector<2x64xf32>
    %62 = arith.mulf %61, %34 : vector<2x64xf32>
    %63 = vector.extract_strided_slice %62 {offsets = [0, 0], sizes = [2, 16], strides = [1, 1]} : vector<2x64xf32> to vector<2x16xf32>
    %64 = vector.extract_strided_slice %62 {offsets = [0, 16], sizes = [2, 16], strides = [1, 1]} : vector<2x64xf32> to vector<2x16xf32>
    %65 = arith.addf %63, %64 : vector<2x16xf32>
    %66 = vector.extract_strided_slice %62 {offsets = [0, 32], sizes = [2, 16], strides = [1, 1]} : vector<2x64xf32> to vector<2x16xf32>
    %67 = arith.addf %65, %66 : vector<2x16xf32>
    %68 = vector.extract_strided_slice %62 {offsets = [0, 48], sizes = [2, 16], strides = [1, 1]} : vector<2x64xf32> to vector<2x16xf32>
    %69 = arith.addf %67, %68 : vector<2x16xf32>
    %cst_34 = arith.constant 5.000000e-01 : f32
    %c0_i32 = arith.constant 0 : i32
    %c2_i32 = arith.constant 2 : i32
    %70 = arith.addi %c0_i32, %c2_i32 : i32
    %71 = arith.index_cast %70 : i32 to index
    %c0_35 = arith.constant 0 : index
    %c0_36 = arith.constant 0 : index
    %72 = vector.load %arg3[%71, %c0_35, %c0_36] : memref<10x2x64xf32, #tpu.memory_space<vmem>>, vector<1x2x64xf32>
    %73 = vector.shape_cast %72 : vector<1x2x64xf32> to vector<2x64xf32>
    %c1_i32 = arith.constant 1 : i32
    %74 = arith.addi %c0_i32, %c1_i32 : i32
    %75 = arith.index_cast %74 : i32 to index
    %c0_37 = arith.constant 0 : index
    %c0_38 = arith.constant 0 : index
    %76 = vector.load %arg2[%75, %c0_37, %c0_38] : memref<9x2x32xf32, #tpu.memory_space<vmem>>, vector<1x2x32xf32>
    %77 = vector.shape_cast %76 : vector<1x2x32xf32> to vector<2x32xf32>
    %cst_39 = arith.constant 2.000000e+00 : f32
    %78 = vector.broadcast %cst_39 : f32 to vector<2x16xf32>
    %79 = arith.mulf %78, %30 : vector<2x16xf32>
    %80 = arith.subf %79, %30 : vector<2x16xf32>
    %81 = vector.broadcast %cst_34 : f32 to vector<2x16xf32>
    %82 = arith.mulf %69, %81 : vector<2x16xf32>
    %83 = arith.addf %80, %82 : vector<2x16xf32>
    %c80_40 = arith.constant 80 : index
    %c0_41 = arith.constant 0 : index
    %84 = vector.load %arg0[%c80_40, %c0_41] : memref<176x128xbf16, #tpu.memory_space<vmem>>, vector<16x32xbf16>
    %85 = arith.truncf %83 : vector<2x16xf32> to vector<2x16xbf16>
    %cst_42 = arith.constant dense<0.000000e+00> : vector<2x32xf32>
    %86 = tpu.matmul %85, %84, %cst_42 {dimension_numbers = #tpu.dot_dimension_numbers<[1], [0], [0], [1], [0, 0, 1, 1], [], []>} : vector<2x16xbf16>, vector<16x32xbf16>, vector<2x32xf32> -> vector<2x32xf32>
    %87 = arith.addf %77, %86 : vector<2x32xf32>
    %cst_43 = arith.constant 0.000000e+00 : f32
    %88 = vector.broadcast %cst_43 : f32 to vector<2x32xf32>
    %89 = arith.cmpf ogt, %87, %88 : vector<2x32xf32>
    %cst_44 = arith.constant 0.00999999977 : f32
    %90 = vector.broadcast %cst_44 : f32 to vector<2x32xf32>
    %91 = arith.mulf %90, %87 : vector<2x32xf32>
    %92 = arith.select %89, %87, %91 : vector<2x32xi1>, vector<2x32xf32>
    %c96_45 = arith.constant 96 : index
    %c0_46 = arith.constant 0 : index
    %93 = vector.load %arg0[%c96_45, %c0_46] : memref<176x128xbf16, #tpu.memory_space<vmem>>, vector<32x32xbf16>
    %94 = arith.truncf %92 : vector<2x32xf32> to vector<2x32xbf16>
    %cst_47 = arith.constant dense<0.000000e+00> : vector<2x32xf32>
    %95 = tpu.matmul %94, %93, %cst_47 {dimension_numbers = #tpu.dot_dimension_numbers<[1], [0], [0], [1], [0, 0, 1, 1], [], []>} : vector<2x32xbf16>, vector<32x32xbf16>, vector<2x32xf32> -> vector<2x32xf32>
    %c24_48 = arith.constant 24 : index
    %c0_49 = arith.constant 0 : index
    %96 = vector.load %arg1[%c24_48, %c0_49] : memref<48x128xf32, #tpu.memory_space<vmem>>, vector<1x32xf32>
    %97 = vector.broadcast %96 : vector<1x32xf32> to vector<2x32xf32>
    %98 = arith.addf %95, %97 : vector<2x32xf32>
    %cst_50 = arith.constant 0.000000e+00 : f32
    %99 = vector.broadcast %cst_50 : f32 to vector<2x32xf32>
    %100 = arith.cmpf ogt, %98, %99 : vector<2x32xf32>
    %cst_51 = arith.constant 0.00999999977 : f32
    %101 = vector.broadcast %cst_51 : f32 to vector<2x32xf32>
    %102 = arith.mulf %101, %98 : vector<2x32xf32>
    %103 = arith.select %100, %98, %102 : vector<2x32xi1>, vector<2x32xf32>
    %c128_52 = arith.constant 128 : index
    %c0_53 = arith.constant 0 : index
    %104 = vector.load %arg0[%c128_52, %c0_53] : memref<176x128xbf16, #tpu.memory_space<vmem>>, vector<32x64xbf16>
    %105 = arith.truncf %103 : vector<2x32xf32> to vector<2x32xbf16>
    %cst_54 = arith.constant dense<0.000000e+00> : vector<2x64xf32>
    %106 = tpu.matmul %105, %104, %cst_54 {dimension_numbers = #tpu.dot_dimension_numbers<[1], [0], [0], [1], [0, 0, 1, 1], [], []>} : vector<2x32xbf16>, vector<32x64xbf16>, vector<2x64xf32> -> vector<2x64xf32>
    %c32_55 = arith.constant 32 : index
    %c0_56 = arith.constant 0 : index
    %107 = vector.load %arg1[%c32_55, %c0_56] : memref<48x128xf32, #tpu.memory_space<vmem>>, vector<1x64xf32>
    %108 = vector.broadcast %107 : vector<1x64xf32> to vector<2x64xf32>
    %109 = arith.addf %106, %108 : vector<2x64xf32>
    %110 = math.tanh %109 : vector<2x64xf32>
    %111 = arith.mulf %110, %73 : vector<2x64xf32>
    %112 = vector.extract_strided_slice %111 {offsets = [0, 0], sizes = [2, 16], strides = [1, 1]} : vector<2x64xf32> to vector<2x16xf32>
    %113 = vector.extract_strided_slice %111 {offsets = [0, 16], sizes = [2, 16], strides = [1, 1]} : vector<2x64xf32> to vector<2x16xf32>
    %114 = arith.addf %112, %113 : vector<2x16xf32>
    %115 = vector.extract_strided_slice %111 {offsets = [0, 32], sizes = [2, 16], strides = [1, 1]} : vector<2x64xf32> to vector<2x16xf32>
    %116 = arith.addf %114, %115 : vector<2x16xf32>
    %117 = vector.extract_strided_slice %111 {offsets = [0, 48], sizes = [2, 16], strides = [1, 1]} : vector<2x64xf32> to vector<2x16xf32>
    %118 = arith.addf %116, %117 : vector<2x16xf32>
    %119 = arith.addf %69, %118 : vector<2x16xf32>
    %cst_57 = arith.constant 5.000000e-01 : f32
    %120 = vector.broadcast %cst_57 : f32 to vector<2x16xf32>
    %121 = arith.mulf %120, %119 : vector<2x16xf32>
    %122 = vector.broadcast %cst_34 : f32 to vector<2x16xf32>
    %123 = arith.mulf %121, %122 : vector<2x16xf32>
    %124 = arith.addf %30, %123 : vector<2x16xf32>
    %c1_i32_58 = arith.constant 1 : i32
    %c2_i32_59 = arith.constant 2 : i32
    %125 = arith.addi %c1_i32_58, %c2_i32_59 : i32
    %126 = arith.index_cast %125 : i32 to index
    %c0_60 = arith.constant 0 : index
    %c0_61 = arith.constant 0 : index
    %127 = vector.load %arg3[%126, %c0_60, %c0_61] : memref<10x2x64xf32, #tpu.memory_space<vmem>>, vector<1x2x64xf32>
    %128 = vector.shape_cast %127 : vector<1x2x64xf32> to vector<2x64xf32>
    %c1_i32_62 = arith.constant 1 : i32
    %129 = arith.addi %c1_i32_58, %c1_i32_62 : i32
    %130 = arith.index_cast %129 : i32 to index
    %c0_63 = arith.constant 0 : index
    %c0_64 = arith.constant 0 : index
    %131 = vector.load %arg2[%130, %c0_63, %c0_64] : memref<9x2x32xf32, #tpu.memory_space<vmem>>, vector<1x2x32xf32>
    %132 = vector.shape_cast %131 : vector<1x2x32xf32> to vector<2x32xf32>
    %cst_65 = arith.constant 2.000000e+00 : f32
    %133 = vector.broadcast %cst_65 : f32 to vector<2x16xf32>
    %134 = arith.mulf %133, %124 : vector<2x16xf32>
    %135 = arith.subf %134, %83 : vector<2x16xf32>
    %136 = vector.broadcast %cst_34 : f32 to vector<2x16xf32>
    %137 = arith.mulf %118, %136 : vector<2x16xf32>
    %138 = arith.addf %135, %137 : vector<2x16xf32>
    %c80_66 = arith.constant 80 : index
    %c0_67 = arith.constant 0 : index
    %139 = vector.load %arg0[%c80_66, %c0_67] : memref<176x128xbf16, #tpu.memory_space<vmem>>, vector<16x32xbf16>
    %140 = arith.truncf %138 : vector<2x16xf32> to vector<2x16xbf16>
    %cst_68 = arith.constant dense<0.000000e+00> : vector<2x32xf32>
    %141 = tpu.matmul %140, %139, %cst_68 {dimension_numbers = #tpu.dot_dimension_numbers<[1], [0], [0], [1], [0, 0, 1, 1], [], []>} : vector<2x16xbf16>, vector<16x32xbf16>, vector<2x32xf32> -> vector<2x32xf32>
    %142 = arith.addf %132, %141 : vector<2x32xf32>
    %cst_69 = arith.constant 0.000000e+00 : f32
    %143 = vector.broadcast %cst_69 : f32 to vector<2x32xf32>
    %144 = arith.cmpf ogt, %142, %143 : vector<2x32xf32>
    %cst_70 = arith.constant 0.00999999977 : f32
    %145 = vector.broadcast %cst_70 : f32 to vector<2x32xf32>
    %146 = arith.mulf %145, %142 : vector<2x32xf32>
    %147 = arith.select %144, %142, %146 : vector<2x32xi1>, vector<2x32xf32>
    %c96_71 = arith.constant 96 : index
    %c0_72 = arith.constant 0 : index
    %148 = vector.load %arg0[%c96_71, %c0_72] : memref<176x128xbf16, #tpu.memory_space<vmem>>, vector<32x32xbf16>
    %149 = arith.truncf %147 : vector<2x32xf32> to vector<2x32xbf16>
    %cst_73 = arith.constant dense<0.000000e+00> : vector<2x32xf32>
    %150 = tpu.matmul %149, %148, %cst_73 {dimension_numbers = #tpu.dot_dimension_numbers<[1], [0], [0], [1], [0, 0, 1, 1], [], []>} : vector<2x32xbf16>, vector<32x32xbf16>, vector<2x32xf32> -> vector<2x32xf32>
    %c24_74 = arith.constant 24 : index
    %c0_75 = arith.constant 0 : index
    %151 = vector.load %arg1[%c24_74, %c0_75] : memref<48x128xf32, #tpu.memory_space<vmem>>, vector<1x32xf32>
    %152 = vector.broadcast %151 : vector<1x32xf32> to vector<2x32xf32>
    %153 = arith.addf %150, %152 : vector<2x32xf32>
    %cst_76 = arith.constant 0.000000e+00 : f32
    %154 = vector.broadcast %cst_76 : f32 to vector<2x32xf32>
    %155 = arith.cmpf ogt, %153, %154 : vector<2x32xf32>
    %cst_77 = arith.constant 0.00999999977 : f32
    %156 = vector.broadcast %cst_77 : f32 to vector<2x32xf32>
    %157 = arith.mulf %156, %153 : vector<2x32xf32>
    %158 = arith.select %155, %153, %157 : vector<2x32xi1>, vector<2x32xf32>
    %c128_78 = arith.constant 128 : index
    %c0_79 = arith.constant 0 : index
    %159 = vector.load %arg0[%c128_78, %c0_79] : memref<176x128xbf16, #tpu.memory_space<vmem>>, vector<32x64xbf16>
    %160 = arith.truncf %158 : vector<2x32xf32> to vector<2x32xbf16>
    %cst_80 = arith.constant dense<0.000000e+00> : vector<2x64xf32>
    %161 = tpu.matmul %160, %159, %cst_80 {dimension_numbers = #tpu.dot_dimension_numbers<[1], [0], [0], [1], [0, 0, 1, 1], [], []>} : vector<2x32xbf16>, vector<32x64xbf16>, vector<2x64xf32> -> vector<2x64xf32>
    %c32_81 = arith.constant 32 : index
    %c0_82 = arith.constant 0 : index
    %162 = vector.load %arg1[%c32_81, %c0_82] : memref<48x128xf32, #tpu.memory_space<vmem>>, vector<1x64xf32>
    %163 = vector.broadcast %162 : vector<1x64xf32> to vector<2x64xf32>
    %164 = arith.addf %161, %163 : vector<2x64xf32>
    %165 = math.tanh %164 : vector<2x64xf32>
    %166 = arith.mulf %165, %128 : vector<2x64xf32>
    %167 = vector.extract_strided_slice %166 {offsets = [0, 0], sizes = [2, 16], strides = [1, 1]} : vector<2x64xf32> to vector<2x16xf32>
    %168 = vector.extract_strided_slice %166 {offsets = [0, 16], sizes = [2, 16], strides = [1, 1]} : vector<2x64xf32> to vector<2x16xf32>
    %169 = arith.addf %167, %168 : vector<2x16xf32>
    %170 = vector.extract_strided_slice %166 {offsets = [0, 32], sizes = [2, 16], strides = [1, 1]} : vector<2x64xf32> to vector<2x16xf32>
    %171 = arith.addf %169, %170 : vector<2x16xf32>
    %172 = vector.extract_strided_slice %166 {offsets = [0, 48], sizes = [2, 16], strides = [1, 1]} : vector<2x64xf32> to vector<2x16xf32>
    %173 = arith.addf %171, %172 : vector<2x16xf32>
    %174 = arith.addf %118, %173 : vector<2x16xf32>
    %cst_83 = arith.constant 5.000000e-01 : f32
    %175 = vector.broadcast %cst_83 : f32 to vector<2x16xf32>
    %176 = arith.mulf %175, %174 : vector<2x16xf32>
    %177 = vector.broadcast %cst_34 : f32 to vector<2x16xf32>
    %178 = arith.mulf %176, %177 : vector<2x16xf32>
    %179 = arith.addf %124, %178 : vector<2x16xf32>
    %c2_i32_84 = arith.constant 2 : i32
    %c2_i32_85 = arith.constant 2 : i32
    %180 = arith.addi %c2_i32_84, %c2_i32_85 : i32
    %181 = arith.index_cast %180 : i32 to index
    %c0_86 = arith.constant 0 : index
    %c0_87 = arith.constant 0 : index
    %182 = vector.load %arg3[%181, %c0_86, %c0_87] : memref<10x2x64xf32, #tpu.memory_space<vmem>>, vector<1x2x64xf32>
    %183 = vector.shape_cast %182 : vector<1x2x64xf32> to vector<2x64xf32>
    %c1_i32_88 = arith.constant 1 : i32
    %184 = arith.addi %c2_i32_84, %c1_i32_88 : i32
    %185 = arith.index_cast %184 : i32 to index
    %c0_89 = arith.constant 0 : index
    %c0_90 = arith.constant 0 : index
    %186 = vector.load %arg2[%185, %c0_89, %c0_90] : memref<9x2x32xf32, #tpu.memory_space<vmem>>, vector<1x2x32xf32>
    %187 = vector.shape_cast %186 : vector<1x2x32xf32> to vector<2x32xf32>
    %cst_91 = arith.constant 2.000000e+00 : f32
    %188 = vector.broadcast %cst_91 : f32 to vector<2x16xf32>
    %189 = arith.mulf %188, %179 : vector<2x16xf32>
    %190 = arith.subf %189, %138 : vector<2x16xf32>
    %191 = vector.broadcast %cst_34 : f32 to vector<2x16xf32>
    %192 = arith.mulf %173, %191 : vector<2x16xf32>
    %193 = arith.addf %190, %192 : vector<2x16xf32>
    %c80_92 = arith.constant 80 : index
    %c0_93 = arith.constant 0 : index
    %194 = vector.load %arg0[%c80_92, %c0_93] : memref<176x128xbf16, #tpu.memory_space<vmem>>, vector<16x32xbf16>
    %195 = arith.truncf %193 : vector<2x16xf32> to vector<2x16xbf16>
    %cst_94 = arith.constant dense<0.000000e+00> : vector<2x32xf32>
    %196 = tpu.matmul %195, %194, %cst_94 {dimension_numbers = #tpu.dot_dimension_numbers<[1], [0], [0], [1], [0, 0, 1, 1], [], []>} : vector<2x16xbf16>, vector<16x32xbf16>, vector<2x32xf32> -> vector<2x32xf32>
    %197 = arith.addf %187, %196 : vector<2x32xf32>
    %cst_95 = arith.constant 0.000000e+00 : f32
    %198 = vector.broadcast %cst_95 : f32 to vector<2x32xf32>
    %199 = arith.cmpf ogt, %197, %198 : vector<2x32xf32>
    %cst_96 = arith.constant 0.00999999977 : f32
    %200 = vector.broadcast %cst_96 : f32 to vector<2x32xf32>
    %201 = arith.mulf %200, %197 : vector<2x32xf32>
    %202 = arith.select %199, %197, %201 : vector<2x32xi1>, vector<2x32xf32>
    %c96_97 = arith.constant 96 : index
    %c0_98 = arith.constant 0 : index
    %203 = vector.load %arg0[%c96_97, %c0_98] : memref<176x128xbf16, #tpu.memory_space<vmem>>, vector<32x32xbf16>
    %204 = arith.truncf %202 : vector<2x32xf32> to vector<2x32xbf16>
    %cst_99 = arith.constant dense<0.000000e+00> : vector<2x32xf32>
    %205 = tpu.matmul %204, %203, %cst_99 {dimension_numbers = #tpu.dot_dimension_numbers<[1], [0], [0], [1], [0, 0, 1, 1], [], []>} : vector<2x32xbf16>, vector<32x32xbf16>, vector<2x32xf32> -> vector<2x32xf32>
    %c24_100 = arith.constant 24 : index
    %c0_101 = arith.constant 0 : index
    %206 = vector.load %arg1[%c24_100, %c0_101] : memref<48x128xf32, #tpu.memory_space<vmem>>, vector<1x32xf32>
    %207 = vector.broadcast %206 : vector<1x32xf32> to vector<2x32xf32>
    %208 = arith.addf %205, %207 : vector<2x32xf32>
    %cst_102 = arith.constant 0.000000e+00 : f32
    %209 = vector.broadcast %cst_102 : f32 to vector<2x32xf32>
    %210 = arith.cmpf ogt, %208, %209 : vector<2x32xf32>
    %cst_103 = arith.constant 0.00999999977 : f32
    %211 = vector.broadcast %cst_103 : f32 to vector<2x32xf32>
    %212 = arith.mulf %211, %208 : vector<2x32xf32>
    %213 = arith.select %210, %208, %212 : vector<2x32xi1>, vector<2x32xf32>
    %c128_104 = arith.constant 128 : index
    %c0_105 = arith.constant 0 : index
    %214 = vector.load %arg0[%c128_104, %c0_105] : memref<176x128xbf16, #tpu.memory_space<vmem>>, vector<32x64xbf16>
    %215 = arith.truncf %213 : vector<2x32xf32> to vector<2x32xbf16>
    %cst_106 = arith.constant dense<0.000000e+00> : vector<2x64xf32>
    %216 = tpu.matmul %215, %214, %cst_106 {dimension_numbers = #tpu.dot_dimension_numbers<[1], [0], [0], [1], [0, 0, 1, 1], [], []>} : vector<2x32xbf16>, vector<32x64xbf16>, vector<2x64xf32> -> vector<2x64xf32>
    %c32_107 = arith.constant 32 : index
    %c0_108 = arith.constant 0 : index
    %217 = vector.load %arg1[%c32_107, %c0_108] : memref<48x128xf32, #tpu.memory_space<vmem>>, vector<1x64xf32>
    %218 = vector.broadcast %217 : vector<1x64xf32> to vector<2x64xf32>
    %219 = arith.addf %216, %218 : vector<2x64xf32>
    %220 = math.tanh %219 : vector<2x64xf32>
    %221 = arith.mulf %220, %183 : vector<2x64xf32>
    %222 = vector.extract_strided_slice %221 {offsets = [0, 0], sizes = [2, 16], strides = [1, 1]} : vector<2x64xf32> to vector<2x16xf32>
    %223 = vector.extract_strided_slice %221 {offsets = [0, 16], sizes = [2, 16], strides = [1, 1]} : vector<2x64xf32> to vector<2x16xf32>
    %224 = arith.addf %222, %223 : vector<2x16xf32>
    %225 = vector.extract_strided_slice %221 {offsets = [0, 32], sizes = [2, 16], strides = [1, 1]} : vector<2x64xf32> to vector<2x16xf32>
    %226 = arith.addf %224, %225 : vector<2x16xf32>
    %227 = vector.extract_strided_slice %221 {offsets = [0, 48], sizes = [2, 16], strides = [1, 1]} : vector<2x64xf32> to vector<2x16xf32>
    %228 = arith.addf %226, %227 : vector<2x16xf32>
    %229 = arith.addf %173, %228 : vector<2x16xf32>
    %cst_109 = arith.constant 5.000000e-01 : f32
    %230 = vector.broadcast %cst_109 : f32 to vector<2x16xf32>
    %231 = arith.mulf %230, %229 : vector<2x16xf32>
    %232 = vector.broadcast %cst_34 : f32 to vector<2x16xf32>
    %233 = arith.mulf %231, %232 : vector<2x16xf32>
    %234 = arith.addf %179, %233 : vector<2x16xf32>
    %c3_i32 = arith.constant 3 : i32
    %c2_i32_110 = arith.constant 2 : i32
    %235 = arith.addi %c3_i32, %c2_i32_110 : i32
    %236 = arith.index_cast %235 : i32 to index
    %c0_111 = arith.constant 0 : index
    %c0_112 = arith.constant 0 : index
    %237 = vector.load %arg3[%236, %c0_111, %c0_112] : memref<10x2x64xf32, #tpu.memory_space<vmem>>, vector<1x2x64xf32>
    %238 = vector.shape_cast %237 : vector<1x2x64xf32> to vector<2x64xf32>
    %c1_i32_113 = arith.constant 1 : i32
    %239 = arith.addi %c3_i32, %c1_i32_113 : i32
    %240 = arith.index_cast %239 : i32 to index
    %c0_114 = arith.constant 0 : index
    %c0_115 = arith.constant 0 : index
    %241 = vector.load %arg2[%240, %c0_114, %c0_115] : memref<9x2x32xf32, #tpu.memory_space<vmem>>, vector<1x2x32xf32>
    %242 = vector.shape_cast %241 : vector<1x2x32xf32> to vector<2x32xf32>
    %cst_116 = arith.constant 2.000000e+00 : f32
    %243 = vector.broadcast %cst_116 : f32 to vector<2x16xf32>
    %244 = arith.mulf %243, %234 : vector<2x16xf32>
    %245 = arith.subf %244, %193 : vector<2x16xf32>
    %246 = vector.broadcast %cst_34 : f32 to vector<2x16xf32>
    %247 = arith.mulf %228, %246 : vector<2x16xf32>
    %248 = arith.addf %245, %247 : vector<2x16xf32>
    %c80_117 = arith.constant 80 : index
    %c0_118 = arith.constant 0 : index
    %249 = vector.load %arg0[%c80_117, %c0_118] : memref<176x128xbf16, #tpu.memory_space<vmem>>, vector<16x32xbf16>
    %250 = arith.truncf %248 : vector<2x16xf32> to vector<2x16xbf16>
    %cst_119 = arith.constant dense<0.000000e+00> : vector<2x32xf32>
    %251 = tpu.matmul %250, %249, %cst_119 {dimension_numbers = #tpu.dot_dimension_numbers<[1], [0], [0], [1], [0, 0, 1, 1], [], []>} : vector<2x16xbf16>, vector<16x32xbf16>, vector<2x32xf32> -> vector<2x32xf32>
    %252 = arith.addf %242, %251 : vector<2x32xf32>
    %cst_120 = arith.constant 0.000000e+00 : f32
    %253 = vector.broadcast %cst_120 : f32 to vector<2x32xf32>
    %254 = arith.cmpf ogt, %252, %253 : vector<2x32xf32>
    %cst_121 = arith.constant 0.00999999977 : f32
    %255 = vector.broadcast %cst_121 : f32 to vector<2x32xf32>
    %256 = arith.mulf %255, %252 : vector<2x32xf32>
    %257 = arith.select %254, %252, %256 : vector<2x32xi1>, vector<2x32xf32>
    %c96_122 = arith.constant 96 : index
    %c0_123 = arith.constant 0 : index
    %258 = vector.load %arg0[%c96_122, %c0_123] : memref<176x128xbf16, #tpu.memory_space<vmem>>, vector<32x32xbf16>
    %259 = arith.truncf %257 : vector<2x32xf32> to vector<2x32xbf16>
    %cst_124 = arith.constant dense<0.000000e+00> : vector<2x32xf32>
    %260 = tpu.matmul %259, %258, %cst_124 {dimension_numbers = #tpu.dot_dimension_numbers<[1], [0], [0], [1], [0, 0, 1, 1], [], []>} : vector<2x32xbf16>, vector<32x32xbf16>, vector<2x32xf32> -> vector<2x32xf32>
    %c24_125 = arith.constant 24 : index
    %c0_126 = arith.constant 0 : index
    %261 = vector.load %arg1[%c24_125, %c0_126] : memref<48x128xf32, #tpu.memory_space<vmem>>, vector<1x32xf32>
    %262 = vector.broadcast %261 : vector<1x32xf32> to vector<2x32xf32>
    %263 = arith.addf %260, %262 : vector<2x32xf32>
    %cst_127 = arith.constant 0.000000e+00 : f32
    %264 = vector.broadcast %cst_127 : f32 to vector<2x32xf32>
    %265 = arith.cmpf ogt, %263, %264 : vector<2x32xf32>
    %cst_128 = arith.constant 0.00999999977 : f32
    %266 = vector.broadcast %cst_128 : f32 to vector<2x32xf32>
    %267 = arith.mulf %266, %263 : vector<2x32xf32>
    %268 = arith.select %265, %263, %267 : vector<2x32xi1>, vector<2x32xf32>
    %c128_129 = arith.constant 128 : index
    %c0_130 = arith.constant 0 : index
    %269 = vector.load %arg0[%c128_129, %c0_130] : memref<176x128xbf16, #tpu.memory_space<vmem>>, vector<32x64xbf16>
    %270 = arith.truncf %268 : vector<2x32xf32> to vector<2x32xbf16>
    %cst_131 = arith.constant dense<0.000000e+00> : vector<2x64xf32>
    %271 = tpu.matmul %270, %269, %cst_131 {dimension_numbers = #tpu.dot_dimension_numbers<[1], [0], [0], [1], [0, 0, 1, 1], [], []>} : vector<2x32xbf16>, vector<32x64xbf16>, vector<2x64xf32> -> vector<2x64xf32>
    %c32_132 = arith.constant 32 : index
    %c0_133 = arith.constant 0 : index
    %272 = vector.load %arg1[%c32_132, %c0_133] : memref<48x128xf32, #tpu.memory_space<vmem>>, vector<1x64xf32>
    %273 = vector.broadcast %272 : vector<1x64xf32> to vector<2x64xf32>
    %274 = arith.addf %271, %273 : vector<2x64xf32>
    %275 = math.tanh %274 : vector<2x64xf32>
    %276 = arith.mulf %275, %238 : vector<2x64xf32>
    %277 = vector.extract_strided_slice %276 {offsets = [0, 0], sizes = [2, 16], strides = [1, 1]} : vector<2x64xf32> to vector<2x16xf32>
    %278 = vector.extract_strided_slice %276 {offsets = [0, 16], sizes = [2, 16], strides = [1, 1]} : vector<2x64xf32> to vector<2x16xf32>
    %279 = arith.addf %277, %278 : vector<2x16xf32>
    %280 = vector.extract_strided_slice %276 {offsets = [0, 32], sizes = [2, 16], strides = [1, 1]} : vector<2x64xf32> to vector<2x16xf32>
    %281 = arith.addf %279, %280 : vector<2x16xf32>
    %282 = vector.extract_strided_slice %276 {offsets = [0, 48], sizes = [2, 16], strides = [1, 1]} : vector<2x64xf32> to vector<2x16xf32>
    %283 = arith.addf %281, %282 : vector<2x16xf32>
    %284 = arith.addf %228, %283 : vector<2x16xf32>
    %cst_134 = arith.constant 5.000000e-01 : f32
    %285 = vector.broadcast %cst_134 : f32 to vector<2x16xf32>
    %286 = arith.mulf %285, %284 : vector<2x16xf32>
    %287 = vector.broadcast %cst_34 : f32 to vector<2x16xf32>
    %288 = arith.mulf %286, %287 : vector<2x16xf32>
    %289 = arith.addf %234, %288 : vector<2x16xf32>
    %c4_i32 = arith.constant 4 : i32
    %c2_i32_135 = arith.constant 2 : i32
    %290 = arith.addi %c4_i32, %c2_i32_135 : i32
    %291 = arith.index_cast %290 : i32 to index
    %c0_136 = arith.constant 0 : index
    %c0_137 = arith.constant 0 : index
    %292 = vector.load %arg3[%291, %c0_136, %c0_137] : memref<10x2x64xf32, #tpu.memory_space<vmem>>, vector<1x2x64xf32>
    %293 = vector.shape_cast %292 : vector<1x2x64xf32> to vector<2x64xf32>
    %c1_i32_138 = arith.constant 1 : i32
    %294 = arith.addi %c4_i32, %c1_i32_138 : i32
    %295 = arith.index_cast %294 : i32 to index
    %c0_139 = arith.constant 0 : index
    %c0_140 = arith.constant 0 : index
    %296 = vector.load %arg2[%295, %c0_139, %c0_140] : memref<9x2x32xf32, #tpu.memory_space<vmem>>, vector<1x2x32xf32>
    %297 = vector.shape_cast %296 : vector<1x2x32xf32> to vector<2x32xf32>
    %cst_141 = arith.constant 2.000000e+00 : f32
    %298 = vector.broadcast %cst_141 : f32 to vector<2x16xf32>
    %299 = arith.mulf %298, %289 : vector<2x16xf32>
    %300 = arith.subf %299, %248 : vector<2x16xf32>
    %301 = vector.broadcast %cst_34 : f32 to vector<2x16xf32>
    %302 = arith.mulf %283, %301 : vector<2x16xf32>
    %303 = arith.addf %300, %302 : vector<2x16xf32>
    %c80_142 = arith.constant 80 : index
    %c0_143 = arith.constant 0 : index
    %304 = vector.load %arg0[%c80_142, %c0_143] : memref<176x128xbf16, #tpu.memory_space<vmem>>, vector<16x32xbf16>
    %305 = arith.truncf %303 : vector<2x16xf32> to vector<2x16xbf16>
    %cst_144 = arith.constant dense<0.000000e+00> : vector<2x32xf32>
    %306 = tpu.matmul %305, %304, %cst_144 {dimension_numbers = #tpu.dot_dimension_numbers<[1], [0], [0], [1], [0, 0, 1, 1], [], []>} : vector<2x16xbf16>, vector<16x32xbf16>, vector<2x32xf32> -> vector<2x32xf32>
    %307 = arith.addf %297, %306 : vector<2x32xf32>
    %cst_145 = arith.constant 0.000000e+00 : f32
    %308 = vector.broadcast %cst_145 : f32 to vector<2x32xf32>
    %309 = arith.cmpf ogt, %307, %308 : vector<2x32xf32>
    %cst_146 = arith.constant 0.00999999977 : f32
    %310 = vector.broadcast %cst_146 : f32 to vector<2x32xf32>
    %311 = arith.mulf %310, %307 : vector<2x32xf32>
    %312 = arith.select %309, %307, %311 : vector<2x32xi1>, vector<2x32xf32>
    %c96_147 = arith.constant 96 : index
    %c0_148 = arith.constant 0 : index
    %313 = vector.load %arg0[%c96_147, %c0_148] : memref<176x128xbf16, #tpu.memory_space<vmem>>, vector<32x32xbf16>
    %314 = arith.truncf %312 : vector<2x32xf32> to vector<2x32xbf16>
    %cst_149 = arith.constant dense<0.000000e+00> : vector<2x32xf32>
    %315 = tpu.matmul %314, %313, %cst_149 {dimension_numbers = #tpu.dot_dimension_numbers<[1], [0], [0], [1], [0, 0, 1, 1], [], []>} : vector<2x32xbf16>, vector<32x32xbf16>, vector<2x32xf32> -> vector<2x32xf32>
    %c24_150 = arith.constant 24 : index
    %c0_151 = arith.constant 0 : index
    %316 = vector.load %arg1[%c24_150, %c0_151] : memref<48x128xf32, #tpu.memory_space<vmem>>, vector<1x32xf32>
    %317 = vector.broadcast %316 : vector<1x32xf32> to vector<2x32xf32>
    %318 = arith.addf %315, %317 : vector<2x32xf32>
    %cst_152 = arith.constant 0.000000e+00 : f32
    %319 = vector.broadcast %cst_152 : f32 to vector<2x32xf32>
    %320 = arith.cmpf ogt, %318, %319 : vector<2x32xf32>
    %cst_153 = arith.constant 0.00999999977 : f32
    %321 = vector.broadcast %cst_153 : f32 to vector<2x32xf32>
    %322 = arith.mulf %321, %318 : vector<2x32xf32>
    %323 = arith.select %320, %318, %322 : vector<2x32xi1>, vector<2x32xf32>
    %c128_154 = arith.constant 128 : index
    %c0_155 = arith.constant 0 : index
    %324 = vector.load %arg0[%c128_154, %c0_155] : memref<176x128xbf16, #tpu.memory_space<vmem>>, vector<32x64xbf16>
    %325 = arith.truncf %323 : vector<2x32xf32> to vector<2x32xbf16>
    %cst_156 = arith.constant dense<0.000000e+00> : vector<2x64xf32>
    %326 = tpu.matmul %325, %324, %cst_156 {dimension_numbers = #tpu.dot_dimension_numbers<[1], [0], [0], [1], [0, 0, 1, 1], [], []>} : vector<2x32xbf16>, vector<32x64xbf16>, vector<2x64xf32> -> vector<2x64xf32>
    %c32_157 = arith.constant 32 : index
    %c0_158 = arith.constant 0 : index
    %327 = vector.load %arg1[%c32_157, %c0_158] : memref<48x128xf32, #tpu.memory_space<vmem>>, vector<1x64xf32>
    %328 = vector.broadcast %327 : vector<1x64xf32> to vector<2x64xf32>
    %329 = arith.addf %326, %328 : vector<2x64xf32>
    %330 = math.tanh %329 : vector<2x64xf32>
    %331 = arith.mulf %330, %293 : vector<2x64xf32>
    %332 = vector.extract_strided_slice %331 {offsets = [0, 0], sizes = [2, 16], strides = [1, 1]} : vector<2x64xf32> to vector<2x16xf32>
    %333 = vector.extract_strided_slice %331 {offsets = [0, 16], sizes = [2, 16], strides = [1, 1]} : vector<2x64xf32> to vector<2x16xf32>
    %334 = arith.addf %332, %333 : vector<2x16xf32>
    %335 = vector.extract_strided_slice %331 {offsets = [0, 32], sizes = [2, 16], strides = [1, 1]} : vector<2x64xf32> to vector<2x16xf32>
    %336 = arith.addf %334, %335 : vector<2x16xf32>
    %337 = vector.extract_strided_slice %331 {offsets = [0, 48], sizes = [2, 16], strides = [1, 1]} : vector<2x64xf32> to vector<2x16xf32>
    %338 = arith.addf %336, %337 : vector<2x16xf32>
    %339 = arith.addf %283, %338 : vector<2x16xf32>
    %cst_159 = arith.constant 5.000000e-01 : f32
    %340 = vector.broadcast %cst_159 : f32 to vector<2x16xf32>
    %341 = arith.mulf %340, %339 : vector<2x16xf32>
    %342 = vector.broadcast %cst_34 : f32 to vector<2x16xf32>
    %343 = arith.mulf %341, %342 : vector<2x16xf32>
    %344 = arith.addf %289, %343 : vector<2x16xf32>
    %c5_i32 = arith.constant 5 : i32
    %c2_i32_160 = arith.constant 2 : i32
    %345 = arith.addi %c5_i32, %c2_i32_160 : i32
    %346 = arith.index_cast %345 : i32 to index
    %c0_161 = arith.constant 0 : index
    %c0_162 = arith.constant 0 : index
    %347 = vector.load %arg3[%346, %c0_161, %c0_162] : memref<10x2x64xf32, #tpu.memory_space<vmem>>, vector<1x2x64xf32>
    %348 = vector.shape_cast %347 : vector<1x2x64xf32> to vector<2x64xf32>
    %c1_i32_163 = arith.constant 1 : i32
    %349 = arith.addi %c5_i32, %c1_i32_163 : i32
    %350 = arith.index_cast %349 : i32 to index
    %c0_164 = arith.constant 0 : index
    %c0_165 = arith.constant 0 : index
    %351 = vector.load %arg2[%350, %c0_164, %c0_165] : memref<9x2x32xf32, #tpu.memory_space<vmem>>, vector<1x2x32xf32>
    %352 = vector.shape_cast %351 : vector<1x2x32xf32> to vector<2x32xf32>
    %cst_166 = arith.constant 2.000000e+00 : f32
    %353 = vector.broadcast %cst_166 : f32 to vector<2x16xf32>
    %354 = arith.mulf %353, %344 : vector<2x16xf32>
    %355 = arith.subf %354, %303 : vector<2x16xf32>
    %356 = vector.broadcast %cst_34 : f32 to vector<2x16xf32>
    %357 = arith.mulf %338, %356 : vector<2x16xf32>
    %358 = arith.addf %355, %357 : vector<2x16xf32>
    %c80_167 = arith.constant 80 : index
    %c0_168 = arith.constant 0 : index
    %359 = vector.load %arg0[%c80_167, %c0_168] : memref<176x128xbf16, #tpu.memory_space<vmem>>, vector<16x32xbf16>
    %360 = arith.truncf %358 : vector<2x16xf32> to vector<2x16xbf16>
    %cst_169 = arith.constant dense<0.000000e+00> : vector<2x32xf32>
    %361 = tpu.matmul %360, %359, %cst_169 {dimension_numbers = #tpu.dot_dimension_numbers<[1], [0], [0], [1], [0, 0, 1, 1], [], []>} : vector<2x16xbf16>, vector<16x32xbf16>, vector<2x32xf32> -> vector<2x32xf32>
    %362 = arith.addf %352, %361 : vector<2x32xf32>
    %cst_170 = arith.constant 0.000000e+00 : f32
    %363 = vector.broadcast %cst_170 : f32 to vector<2x32xf32>
    %364 = arith.cmpf ogt, %362, %363 : vector<2x32xf32>
    %cst_171 = arith.constant 0.00999999977 : f32
    %365 = vector.broadcast %cst_171 : f32 to vector<2x32xf32>
    %366 = arith.mulf %365, %362 : vector<2x32xf32>
    %367 = arith.select %364, %362, %366 : vector<2x32xi1>, vector<2x32xf32>
    %c96_172 = arith.constant 96 : index
    %c0_173 = arith.constant 0 : index
    %368 = vector.load %arg0[%c96_172, %c0_173] : memref<176x128xbf16, #tpu.memory_space<vmem>>, vector<32x32xbf16>
    %369 = arith.truncf %367 : vector<2x32xf32> to vector<2x32xbf16>
    %cst_174 = arith.constant dense<0.000000e+00> : vector<2x32xf32>
    %370 = tpu.matmul %369, %368, %cst_174 {dimension_numbers = #tpu.dot_dimension_numbers<[1], [0], [0], [1], [0, 0, 1, 1], [], []>} : vector<2x32xbf16>, vector<32x32xbf16>, vector<2x32xf32> -> vector<2x32xf32>
    %c24_175 = arith.constant 24 : index
    %c0_176 = arith.constant 0 : index
    %371 = vector.load %arg1[%c24_175, %c0_176] : memref<48x128xf32, #tpu.memory_space<vmem>>, vector<1x32xf32>
    %372 = vector.broadcast %371 : vector<1x32xf32> to vector<2x32xf32>
    %373 = arith.addf %370, %372 : vector<2x32xf32>
    %cst_177 = arith.constant 0.000000e+00 : f32
    %374 = vector.broadcast %cst_177 : f32 to vector<2x32xf32>
    %375 = arith.cmpf ogt, %373, %374 : vector<2x32xf32>
    %cst_178 = arith.constant 0.00999999977 : f32
    %376 = vector.broadcast %cst_178 : f32 to vector<2x32xf32>
    %377 = arith.mulf %376, %373 : vector<2x32xf32>
    %378 = arith.select %375, %373, %377 : vector<2x32xi1>, vector<2x32xf32>
    %c128_179 = arith.constant 128 : index
    %c0_180 = arith.constant 0 : index
    %379 = vector.load %arg0[%c128_179, %c0_180] : memref<176x128xbf16, #tpu.memory_space<vmem>>, vector<32x64xbf16>
    %380 = arith.truncf %378 : vector<2x32xf32> to vector<2x32xbf16>
    %cst_181 = arith.constant dense<0.000000e+00> : vector<2x64xf32>
    %381 = tpu.matmul %380, %379, %cst_181 {dimension_numbers = #tpu.dot_dimension_numbers<[1], [0], [0], [1], [0, 0, 1, 1], [], []>} : vector<2x32xbf16>, vector<32x64xbf16>, vector<2x64xf32> -> vector<2x64xf32>
    %c32_182 = arith.constant 32 : index
    %c0_183 = arith.constant 0 : index
    %382 = vector.load %arg1[%c32_182, %c0_183] : memref<48x128xf32, #tpu.memory_space<vmem>>, vector<1x64xf32>
    %383 = vector.broadcast %382 : vector<1x64xf32> to vector<2x64xf32>
    %384 = arith.addf %381, %383 : vector<2x64xf32>
    %385 = math.tanh %384 : vector<2x64xf32>
    %386 = arith.mulf %385, %348 : vector<2x64xf32>
    %387 = vector.extract_strided_slice %386 {offsets = [0, 0], sizes = [2, 16], strides = [1, 1]} : vector<2x64xf32> to vector<2x16xf32>
    %388 = vector.extract_strided_slice %386 {offsets = [0, 16], sizes = [2, 16], strides = [1, 1]} : vector<2x64xf32> to vector<2x16xf32>
    %389 = arith.addf %387, %388 : vector<2x16xf32>
    %390 = vector.extract_strided_slice %386 {offsets = [0, 32], sizes = [2, 16], strides = [1, 1]} : vector<2x64xf32> to vector<2x16xf32>
    %391 = arith.addf %389, %390 : vector<2x16xf32>
    %392 = vector.extract_strided_slice %386 {offsets = [0, 48], sizes = [2, 16], strides = [1, 1]} : vector<2x64xf32> to vector<2x16xf32>
    %393 = arith.addf %391, %392 : vector<2x16xf32>
    %394 = arith.addf %338, %393 : vector<2x16xf32>
    %cst_184 = arith.constant 5.000000e-01 : f32
    %395 = vector.broadcast %cst_184 : f32 to vector<2x16xf32>
    %396 = arith.mulf %395, %394 : vector<2x16xf32>
    %397 = vector.broadcast %cst_34 : f32 to vector<2x16xf32>
    %398 = arith.mulf %396, %397 : vector<2x16xf32>
    %399 = arith.addf %344, %398 : vector<2x16xf32>
    %c6_i32 = arith.constant 6 : i32
    %c2_i32_185 = arith.constant 2 : i32
    %400 = arith.addi %c6_i32, %c2_i32_185 : i32
    %401 = arith.index_cast %400 : i32 to index
    %c0_186 = arith.constant 0 : index
    %c0_187 = arith.constant 0 : index
    %402 = vector.load %arg3[%401, %c0_186, %c0_187] : memref<10x2x64xf32, #tpu.memory_space<vmem>>, vector<1x2x64xf32>
    %403 = vector.shape_cast %402 : vector<1x2x64xf32> to vector<2x64xf32>
    %c1_i32_188 = arith.constant 1 : i32
    %404 = arith.addi %c6_i32, %c1_i32_188 : i32
    %405 = arith.index_cast %404 : i32 to index
    %c0_189 = arith.constant 0 : index
    %c0_190 = arith.constant 0 : index
    %406 = vector.load %arg2[%405, %c0_189, %c0_190] : memref<9x2x32xf32, #tpu.memory_space<vmem>>, vector<1x2x32xf32>
    %407 = vector.shape_cast %406 : vector<1x2x32xf32> to vector<2x32xf32>
    %cst_191 = arith.constant 2.000000e+00 : f32
    %408 = vector.broadcast %cst_191 : f32 to vector<2x16xf32>
    %409 = arith.mulf %408, %399 : vector<2x16xf32>
    %410 = arith.subf %409, %358 : vector<2x16xf32>
    %411 = vector.broadcast %cst_34 : f32 to vector<2x16xf32>
    %412 = arith.mulf %393, %411 : vector<2x16xf32>
    %413 = arith.addf %410, %412 : vector<2x16xf32>
    %c80_192 = arith.constant 80 : index
    %c0_193 = arith.constant 0 : index
    %414 = vector.load %arg0[%c80_192, %c0_193] : memref<176x128xbf16, #tpu.memory_space<vmem>>, vector<16x32xbf16>
    %415 = arith.truncf %413 : vector<2x16xf32> to vector<2x16xbf16>
    %cst_194 = arith.constant dense<0.000000e+00> : vector<2x32xf32>
    %416 = tpu.matmul %415, %414, %cst_194 {dimension_numbers = #tpu.dot_dimension_numbers<[1], [0], [0], [1], [0, 0, 1, 1], [], []>} : vector<2x16xbf16>, vector<16x32xbf16>, vector<2x32xf32> -> vector<2x32xf32>
    %417 = arith.addf %407, %416 : vector<2x32xf32>
    %cst_195 = arith.constant 0.000000e+00 : f32
    %418 = vector.broadcast %cst_195 : f32 to vector<2x32xf32>
    %419 = arith.cmpf ogt, %417, %418 : vector<2x32xf32>
    %cst_196 = arith.constant 0.00999999977 : f32
    %420 = vector.broadcast %cst_196 : f32 to vector<2x32xf32>
    %421 = arith.mulf %420, %417 : vector<2x32xf32>
    %422 = arith.select %419, %417, %421 : vector<2x32xi1>, vector<2x32xf32>
    %c96_197 = arith.constant 96 : index
    %c0_198 = arith.constant 0 : index
    %423 = vector.load %arg0[%c96_197, %c0_198] : memref<176x128xbf16, #tpu.memory_space<vmem>>, vector<32x32xbf16>
    %424 = arith.truncf %422 : vector<2x32xf32> to vector<2x32xbf16>
    %cst_199 = arith.constant dense<0.000000e+00> : vector<2x32xf32>
    %425 = tpu.matmul %424, %423, %cst_199 {dimension_numbers = #tpu.dot_dimension_numbers<[1], [0], [0], [1], [0, 0, 1, 1], [], []>} : vector<2x32xbf16>, vector<32x32xbf16>, vector<2x32xf32> -> vector<2x32xf32>
    %c24_200 = arith.constant 24 : index
    %c0_201 = arith.constant 0 : index
    %426 = vector.load %arg1[%c24_200, %c0_201] : memref<48x128xf32, #tpu.memory_space<vmem>>, vector<1x32xf32>
    %427 = vector.broadcast %426 : vector<1x32xf32> to vector<2x32xf32>
    %428 = arith.addf %425, %427 : vector<2x32xf32>
    %cst_202 = arith.constant 0.000000e+00 : f32
    %429 = vector.broadcast %cst_202 : f32 to vector<2x32xf32>
    %430 = arith.cmpf ogt, %428, %429 : vector<2x32xf32>
    %cst_203 = arith.constant 0.00999999977 : f32
    %431 = vector.broadcast %cst_203 : f32 to vector<2x32xf32>
    %432 = arith.mulf %431, %428 : vector<2x32xf32>
    %433 = arith.select %430, %428, %432 : vector<2x32xi1>, vector<2x32xf32>
    %c128_204 = arith.constant 128 : index
    %c0_205 = arith.constant 0 : index
    %434 = vector.load %arg0[%c128_204, %c0_205] : memref<176x128xbf16, #tpu.memory_space<vmem>>, vector<32x64xbf16>
    %435 = arith.truncf %433 : vector<2x32xf32> to vector<2x32xbf16>
    %cst_206 = arith.constant dense<0.000000e+00> : vector<2x64xf32>
    %436 = tpu.matmul %435, %434, %cst_206 {dimension_numbers = #tpu.dot_dimension_numbers<[1], [0], [0], [1], [0, 0, 1, 1], [], []>} : vector<2x32xbf16>, vector<32x64xbf16>, vector<2x64xf32> -> vector<2x64xf32>
    %c32_207 = arith.constant 32 : index
    %c0_208 = arith.constant 0 : index
    %437 = vector.load %arg1[%c32_207, %c0_208] : memref<48x128xf32, #tpu.memory_space<vmem>>, vector<1x64xf32>
    %438 = vector.broadcast %437 : vector<1x64xf32> to vector<2x64xf32>
    %439 = arith.addf %436, %438 : vector<2x64xf32>
    %440 = math.tanh %439 : vector<2x64xf32>
    %441 = arith.mulf %440, %403 : vector<2x64xf32>
    %442 = vector.extract_strided_slice %441 {offsets = [0, 0], sizes = [2, 16], strides = [1, 1]} : vector<2x64xf32> to vector<2x16xf32>
    %443 = vector.extract_strided_slice %441 {offsets = [0, 16], sizes = [2, 16], strides = [1, 1]} : vector<2x64xf32> to vector<2x16xf32>
    %444 = arith.addf %442, %443 : vector<2x16xf32>
    %445 = vector.extract_strided_slice %441 {offsets = [0, 32], sizes = [2, 16], strides = [1, 1]} : vector<2x64xf32> to vector<2x16xf32>
    %446 = arith.addf %444, %445 : vector<2x16xf32>
    %447 = vector.extract_strided_slice %441 {offsets = [0, 48], sizes = [2, 16], strides = [1, 1]} : vector<2x64xf32> to vector<2x16xf32>
    %448 = arith.addf %446, %447 : vector<2x16xf32>
    %449 = arith.addf %393, %448 : vector<2x16xf32>
    %cst_209 = arith.constant 5.000000e-01 : f32
    %450 = vector.broadcast %cst_209 : f32 to vector<2x16xf32>
    %451 = arith.mulf %450, %449 : vector<2x16xf32>
    %452 = vector.broadcast %cst_34 : f32 to vector<2x16xf32>
    %453 = arith.mulf %451, %452 : vector<2x16xf32>
    %454 = arith.addf %399, %453 : vector<2x16xf32>
    %c7_i32 = arith.constant 7 : i32
    %c2_i32_210 = arith.constant 2 : i32
    %455 = arith.addi %c7_i32, %c2_i32_210 : i32
    %456 = arith.index_cast %455 : i32 to index
    %c0_211 = arith.constant 0 : index
    %c0_212 = arith.constant 0 : index
    %457 = vector.load %arg3[%456, %c0_211, %c0_212] : memref<10x2x64xf32, #tpu.memory_space<vmem>>, vector<1x2x64xf32>
    %458 = vector.shape_cast %457 : vector<1x2x64xf32> to vector<2x64xf32>
    %c1_i32_213 = arith.constant 1 : i32
    %459 = arith.addi %c7_i32, %c1_i32_213 : i32
    %460 = arith.index_cast %459 : i32 to index
    %c0_214 = arith.constant 0 : index
    %c0_215 = arith.constant 0 : index
    %461 = vector.load %arg2[%460, %c0_214, %c0_215] : memref<9x2x32xf32, #tpu.memory_space<vmem>>, vector<1x2x32xf32>
    %462 = vector.shape_cast %461 : vector<1x2x32xf32> to vector<2x32xf32>
    %cst_216 = arith.constant 2.000000e+00 : f32
    %463 = vector.broadcast %cst_216 : f32 to vector<2x16xf32>
    %464 = arith.mulf %463, %454 : vector<2x16xf32>
    %465 = arith.subf %464, %413 : vector<2x16xf32>
    %466 = vector.broadcast %cst_34 : f32 to vector<2x16xf32>
    %467 = arith.mulf %448, %466 : vector<2x16xf32>
    %468 = arith.addf %465, %467 : vector<2x16xf32>
    %c80_217 = arith.constant 80 : index
    %c0_218 = arith.constant 0 : index
    %469 = vector.load %arg0[%c80_217, %c0_218] : memref<176x128xbf16, #tpu.memory_space<vmem>>, vector<16x32xbf16>
    %470 = arith.truncf %468 : vector<2x16xf32> to vector<2x16xbf16>
    %cst_219 = arith.constant dense<0.000000e+00> : vector<2x32xf32>
    %471 = tpu.matmul %470, %469, %cst_219 {dimension_numbers = #tpu.dot_dimension_numbers<[1], [0], [0], [1], [0, 0, 1, 1], [], []>} : vector<2x16xbf16>, vector<16x32xbf16>, vector<2x32xf32> -> vector<2x32xf32>
    %472 = arith.addf %462, %471 : vector<2x32xf32>
    %cst_220 = arith.constant 0.000000e+00 : f32
    %473 = vector.broadcast %cst_220 : f32 to vector<2x32xf32>
    %474 = arith.cmpf ogt, %472, %473 : vector<2x32xf32>
    %cst_221 = arith.constant 0.00999999977 : f32
    %475 = vector.broadcast %cst_221 : f32 to vector<2x32xf32>
    %476 = arith.mulf %475, %472 : vector<2x32xf32>
    %477 = arith.select %474, %472, %476 : vector<2x32xi1>, vector<2x32xf32>
    %c96_222 = arith.constant 96 : index
    %c0_223 = arith.constant 0 : index
    %478 = vector.load %arg0[%c96_222, %c0_223] : memref<176x128xbf16, #tpu.memory_space<vmem>>, vector<32x32xbf16>
    %479 = arith.truncf %477 : vector<2x32xf32> to vector<2x32xbf16>
    %cst_224 = arith.constant dense<0.000000e+00> : vector<2x32xf32>
    %480 = tpu.matmul %479, %478, %cst_224 {dimension_numbers = #tpu.dot_dimension_numbers<[1], [0], [0], [1], [0, 0, 1, 1], [], []>} : vector<2x32xbf16>, vector<32x32xbf16>, vector<2x32xf32> -> vector<2x32xf32>
    %c24_225 = arith.constant 24 : index
    %c0_226 = arith.constant 0 : index
    %481 = vector.load %arg1[%c24_225, %c0_226] : memref<48x128xf32, #tpu.memory_space<vmem>>, vector<1x32xf32>
    %482 = vector.broadcast %481 : vector<1x32xf32> to vector<2x32xf32>
    %483 = arith.addf %480, %482 : vector<2x32xf32>
    %cst_227 = arith.constant 0.000000e+00 : f32
    %484 = vector.broadcast %cst_227 : f32 to vector<2x32xf32>
    %485 = arith.cmpf ogt, %483, %484 : vector<2x32xf32>
    %cst_228 = arith.constant 0.00999999977 : f32
    %486 = vector.broadcast %cst_228 : f32 to vector<2x32xf32>
    %487 = arith.mulf %486, %483 : vector<2x32xf32>
    %488 = arith.select %485, %483, %487 : vector<2x32xi1>, vector<2x32xf32>
    %c128_229 = arith.constant 128 : index
    %c0_230 = arith.constant 0 : index
    %489 = vector.load %arg0[%c128_229, %c0_230] : memref<176x128xbf16, #tpu.memory_space<vmem>>, vector<32x64xbf16>
    %490 = arith.truncf %488 : vector<2x32xf32> to vector<2x32xbf16>
    %cst_231 = arith.constant dense<0.000000e+00> : vector<2x64xf32>
    %491 = tpu.matmul %490, %489, %cst_231 {dimension_numbers = #tpu.dot_dimension_numbers<[1], [0], [0], [1], [0, 0, 1, 1], [], []>} : vector<2x32xbf16>, vector<32x64xbf16>, vector<2x64xf32> -> vector<2x64xf32>
    %c32_232 = arith.constant 32 : index
    %c0_233 = arith.constant 0 : index
    %492 = vector.load %arg1[%c32_232, %c0_233] : memref<48x128xf32, #tpu.memory_space<vmem>>, vector<1x64xf32>
    %493 = vector.broadcast %492 : vector<1x64xf32> to vector<2x64xf32>
    %494 = arith.addf %491, %493 : vector<2x64xf32>
    %495 = math.tanh %494 : vector<2x64xf32>
    %496 = arith.mulf %495, %458 : vector<2x64xf32>
    %497 = vector.extract_strided_slice %496 {offsets = [0, 0], sizes = [2, 16], strides = [1, 1]} : vector<2x64xf32> to vector<2x16xf32>
    %498 = vector.extract_strided_slice %496 {offsets = [0, 16], sizes = [2, 16], strides = [1, 1]} : vector<2x64xf32> to vector<2x16xf32>
    %499 = arith.addf %497, %498 : vector<2x16xf32>
    %500 = vector.extract_strided_slice %496 {offsets = [0, 32], sizes = [2, 16], strides = [1, 1]} : vector<2x64xf32> to vector<2x16xf32>
    %501 = arith.addf %499, %500 : vector<2x16xf32>
    %502 = vector.extract_strided_slice %496 {offsets = [0, 48], sizes = [2, 16], strides = [1, 1]} : vector<2x64xf32> to vector<2x16xf32>
    %503 = arith.addf %501, %502 : vector<2x16xf32>
    %504 = arith.addf %448, %503 : vector<2x16xf32>
    %cst_234 = arith.constant 5.000000e-01 : f32
    %505 = vector.broadcast %cst_234 : f32 to vector<2x16xf32>
    %506 = arith.mulf %505, %504 : vector<2x16xf32>
    %507 = vector.broadcast %cst_34 : f32 to vector<2x16xf32>
    %508 = arith.mulf %506, %507 : vector<2x16xf32>
    %509 = arith.addf %454, %508 : vector<2x16xf32>
    %c8_i32 = arith.constant 8 : i32
    %c160 = arith.constant 160 : index
    %c0_235 = arith.constant 0 : index
    %510 = vector.load %arg0[%c160, %c0_235] : memref<176x128xbf16, #tpu.memory_space<vmem>>, vector<16x128xbf16>
    %511 = arith.truncf %509 : vector<2x16xf32> to vector<2x16xbf16>
    %cst_236 = arith.constant dense<0.000000e+00> : vector<2x128xf32>
    %512 = tpu.matmul %511, %510, %cst_236 {dimension_numbers = #tpu.dot_dimension_numbers<[1], [0], [0], [1], [0, 0, 1, 1], [], []>} : vector<2x16xbf16>, vector<16x128xbf16>, vector<2x128xf32> -> vector<2x128xf32>
    %c40 = arith.constant 40 : index
    %c0_237 = arith.constant 0 : index
    %513 = vector.load %arg1[%c40, %c0_237] : memref<48x128xf32, #tpu.memory_space<vmem>>, vector<1x128xf32>
    %514 = vector.broadcast %513 : vector<1x128xf32> to vector<2x128xf32>
    %515 = arith.addf %512, %514 : vector<2x128xf32>
    %c0_238 = arith.constant 0 : index
    %c0_239 = arith.constant 0 : index
    %516 = vector.load %arg4[%c0_238, %c0_239] : memref<2x128xf32, #tpu.memory_space<vmem>>, vector<2x128xf32>
    tpu.vector_store %arg4[%c0_238, %c0_239], %515 {strides = array<i32>} : memref<2x128xf32, #tpu.memory_space<vmem>>, vector<2x128xf32>,
    return
  }
}

</mosaic_0001>

<bundles_post_ra>
// kernel: forward.1
= control target key start
LH: loop header
LB: loop body
LE: loop exit
PB: predicated region body
PF: predicated region fallthrough
CT: control target
= control target key end

     0   :  { %vm30_vm0 = vcmask 1041408   ;;  %v2214_v0 = vmov 0.0   ;;  %vm2215_vm1 = vmmov 0   ;;  %vm26_vm2 = vcmask 31744   ;;  %s2216_s25 = smov 80   ;;  %s2217_s26 = smov 112   ;;  %s2674_s0 = inlined_call_operand.vmem [shape: bf16[176,128], index: 0, kind: input, shape index: {}]   ;;  %s2675_s3 = inlined_call_operand.vmem [shape: f32[10,2,64], index: 3, kind: input, shape index: {}]   ;;  %s2676_s1 = inlined_call_operand.vmem [shape: f32[48,128], index: 1, kind: input, shape index: {}]   ;;  %s2677_s2 = inlined_call_operand.vmem [shape: f32[9,2,32], index: 2, kind: input, shape index: {}]   ;;  %s2678_s4 = inlined_call_operand.vmem [shape: f32[2,128], index: 4, kind: output, shape index: {}]  }
   0x1   :  { %1955 = vmatprep.subr.bf16.mxu0 %v2214_v0  ;;  %v19_v1 = vld [vmem:[%s2674_s0] sm:$0x3]  ;;  %1957 = vmatprep.mubr.msk.bf16.mxu0 %vm2215_vm1, %v2214_v0  ;;  %v2186_v5 = vld [vmem:[%s2674_s0 + $0x8] sm:$0xff]   ;;  %v2187_v6 = vld [vmem:[%s2674_s0 + $0x10] sm:$0xff]   ;;  %vm99_vm4 = vcmask 261120   ;;  %vm223_vm6 = vcmask 130048  }
   0x2   :  { %v18_v2 = vld [vmem:[%s2675_s3] sm:$0x3]  ;;  %v32_v3 = vsel %vm30_vm0, %v19_v1, 0  ;;  %1961 = vmatprep.subr.bf16.mxu1 %v2214_v0  ;;  %1965 = vmatprep.mubr.msk.bf16.mxu1 %vm2215_vm1, %v2214_v0  ;;  %v2188_v16 = vld [vmem:[%s2674_s0 + $0x18] sm:$0xff]   ;;  %v2284_v18 = vld [vmem:[%s2674_s0 + $0x28] sm:$0xff]   ;;  %s2218_s27 = smov 96  }
   0x3   :  { %v20_v4 = vpack.c.bf16 %v18_v2, %v18_v2  ;;  %1956 = vmatpush3.bf16.msra.mxu0 %v32_v3  ;;  %1962 = vmatpush3.bf16.msra.mxu1 %v2186_v5  ;;  %v1809_v7 = vld [vmem:[%s2676_s1] ss:$0 sm:$0xff]  ;;  %v1811_v19 = vld [vmem:[%s2676_s1 + $0x8] ss:$0 sm:$0xff]  ;;  %v1815_v28 = vld [vmem:[%s2676_s1 + $0x10] ss:$0 sm:$0xff] }
   0x4   :  { %1969 = vmatprep.subr.bf16.mxu0 %v2214_v0  ;;  %1963 = vmatprep.subr.bf16.mxu1 %v2214_v0  ;;  %v2189_v17 = vld [vmem:[%s2674_s0 + $0x20] sm:$0xff]   ;;  %v2307_v35 = vld [vmem:[%s2674_s0 + $0x30] sm:$0xff]   ;;  %v2314_v36 = vld [vmem:[%s2674_s0 + $0x38] sm:$0xff]  }
   0x5   :  { %v211_v37 = vld [vmem:[%s2677_s2] sm:$0x3]  ;;  %v2336_v47 = vld [vmem:[%s2674_s0 + $0x48] sm:$0xff]   ;;  %v2343_v48 = vld [vmem:[%s2676_s1 + $0x18] ss:$0 sm:$0xff] }
   0x6   :  { %1958 = vmatmul.mubr.msk.bf16.vlgmr.msra.gmra.mrb[0].mxu0 %vm26_vm2, %v20_v4  ;;  %v2329_v46 = vld [vmem:[%s2674_s0 + $0x40] sm:$0xff]  }
   0x7   :  { %1973 = vmatprep.mubr.msk.bf16.mxu0 %vm2215_vm1, %v2214_v0  ;;  %1964 = vmatpush3.bf16.msra.mxu1 %v2187_v6  ;;  %v2356_v57 = vld [vmem:[%s2676_s1 + $0x20] ss:$0 sm:$0xff]  ;;  %v1819_v63 = vld [vmem:[%s2675_s3 + $0x2] sm:$0x3] }
   0x8   :  { %1977 = vmatprep.subr.bf16.mxu1 %v2214_v0  ;;  %1970 = vmatpush3.bf16.msra.mxu0 %v2188_v16 }
   0x9   :  { %1971 = vmatprep.subr.bf16.mxu0 %v2214_v0 }
   0xc   :  { %1972 = vmatpush3.bf16.msra.mxu0 %v2189_v17 }
   0xd   :  { %1983 = vmatprep.subr.bf16.mxu0 %v2214_v0 }
  0xd9   :  { %v68_v8 = vpop.f32.mrb[0].mxu0 }
  0xda   :  { %v69_v9 = vadd.f32 %v1809_v7, %v68_v8  ;;  %v1959_v10 = vpop.f32.mrb[1].mxu0 }
  0xdb   :  { %v71_v11 = vpop.f32.mrb[2].mxu0 }
  0xdc   :  { %vm74_vm3 = vcmp.gt.f32.partialorder %v69_v9, 0.0  ;;  %v75_v12 = vmul.f32 0.01, %v69_v9  ;;  %v1960_v13 = vpop.f32.mrb[3].mxu0 }
  0xde   :  { %v76_v14 = vsel %vm74_vm3, %v69_v9, %v75_v12 }
  0xdf   :  { %v81_v15 = vpack.c.bf16 %v76_v14, %v76_v14  ;;  %v1831_v14 = vld [vmem:[%s2677_s2 + $0x2] sm:$0x3] }
  0xe1   :  { %1966 = vmatmul.mubr.msk.bf16.vlgmr.msra.gmra.mrb[0].mxu1 %vm99_vm4, %v81_v15 }
  0xe2   :  { %1979 = vmatprep.mubr.msk.bf16.mxu1 %vm2215_vm1, %v2214_v0  ;;  %1978 = vmatpush3.bf16.msra.mxu1 %v2284_v18 }
  0xe3   :  { %1991 = vmatprep.subr.bf16.mxu1 %v2214_v0 }
 0x1b4   :  { %v137_v20 = vpop.f32.mrb[0].mxu1 }
 0x1b5   :  { %v138_v21 = vadd.f32 %v1811_v19, %v137_v20  ;;  %v1967_v22 = vpop.f32.mrb[1].mxu1 }
 0x1b6   :  { %v140_v23 = vpop.f32.mrb[2].mxu1 }
 0x1b7   :  { %vm143_vm5 = vcmp.gt.f32.partialorder %v138_v21, 0.0  ;;  %v144_v24 = vmul.f32 0.01, %v138_v21  ;;  %v1968_v25 = vpop.f32.mrb[3].mxu1 }
 0x1b9   :  { %v145_v26 = vsel %vm143_vm5, %v138_v21, %v144_v24 }
 0x1ba   :  { %v150_v27 = vpack.c.bf16 %v145_v26, %v145_v26 }
 0x1bc   :  { %1974 = vmatmul.mubr.msk.bf16.vlgmr.msra.gmra.mrb[4].mxu0 %vm99_vm4, %v150_v27 }
 0x1bd   :  { %1987 = vmatprep.mubr.msk.bf16.mxu0 %vm2215_vm1, %v2214_v0  ;;  %1984 = vmatpush3.bf16.msra.mxu0 %v2307_v35 }
 0x1be   :  { %1985 = vmatprep.subr.bf16.mxu0 %v2214_v0 }
 0x1c1   :  { %1986 = vmatpush3.bf16.msra.mxu0 %v2314_v36 }
 0x1c2   :  { %1999 = vmatprep.subr.bf16.mxu0 %v2214_v0 }
 0x28f   :  { %v205_v29 = vpop.f32.mrb[4].mxu0 }
 0x290   :  { %v2297_v30 = vadd.f32 %v1815_v28, %v205_v29  ;;  %v1975_v31 = vpop.f32.mrb[5].mxu0 }
 0x291   :  { %v208_v32 = vpop.f32.mrb[6].mxu0 }
 0x292   :  { %v216_v33 = vpack.c.bf16 %v2297_v30, %v2297_v30  ;;  %v1976_v34 = vpop.f32.mrb[7].mxu0  ;;  %v423_v6 = vmul.f32 2.0, %v2297_v30 }
 0x294   :  { %1980 = vmatmul.mubr.msk.bf16.vlgmr.msra.gmra.mrb[4].mxu1 %vm223_vm6, %v216_v33  ;;  %v424_v10 = vsub.f32 %v423_v6, %v2297_v30 }
 0x295   :  { %1995 = vmatprep.mubr.msk.bf16.mxu1 %vm2215_vm1, %v2214_v0  ;;  %1992 = vmatpush3.bf16.msra.mxu1 %v2329_v46 }
 0x296   :  { %1993 = vmatprep.subr.bf16.mxu1 %v2214_v0 }
 0x299   :  { %1994 = vmatpush3.bf16.msra.mxu1 %v2336_v47 }
 0x29a   :  { %2005 = vmatprep.subr.bf16.mxu1 %v2214_v0 }
 0x367   :  { %v261_v38 = vpop.f32.mrb[4].mxu1 }
 0x368   :  { %v267_v39 = vadd.f32 %v261_v38, %v211_v37  ;;  %v1981_v40 = vpop.f32.mrb[5].mxu1 }
 0x369   :  { %v264_v41 = vpop.f32.mrb[6].mxu1  ;;  %v1830_v40 = vld [vmem:[%s2675_s3 + $0x4] sm:$0x3] }
 0x36a   :  { %vm268_vm7 = vcmp.gt.f32.partialorder %v267_v39, 0.0  ;;  %v269_v42 = vmul.f32 0.01, %v267_v39  ;;  %v1982_v43 = vpop.f32.mrb[7].mxu1 }
 0x36c   :  { %v270_v44 = vsel %vm268_vm7, %v267_v39, %v269_v42 }
 0x36d   :  { %v275_v45 = vpack.c.bf16 %v270_v44, %v270_v44 }
 0x36f   :  { %1988 = vmatmul.mubr.msk.bf16.vlgmr.msra.gmra.mrb[8].mxu0 %vm99_vm4, %v275_v45 }
 0x370   :  { %2000 = vmatpush3.bf16.msra.mxu0 %v2284_v18  ;;  %2001 = vmatprep.mubr.msk.bf16.mxu0 %vm2215_vm1, %v2214_v0 }
 0x371   :  { %2013 = vmatprep.subr.bf16.mxu0 %v2214_v0 }
 0x442   :  { %v330_v49 = vpop.f32.mrb[8].mxu0 }
 0x443   :  { %v331_v50 = vadd.f32 %v2343_v48, %v330_v49  ;;  %v1989_v51 = vpop.f32.mrb[9].mxu0 }
 0x444   :  { %v333_v52 = vpop.f32.mrb[10].mxu0 }
 0x445   :  { %vm336_vm8 = vcmp.gt.f32.partialorder %v331_v50, 0.0  ;;  %v337_v53 = vmul.f32 0.01, %v331_v50  ;;  %v1990_v54 = vpop.f32.mrb[11].mxu0 }
 0x447   :  { %v338_v55 = vsel %vm336_vm8, %v331_v50, %v337_v53 }
 0x448   :  { %v343_v56 = vpack.c.bf16 %v338_v55, %v338_v55 }
 0x44a   :  { %1996 = vmatmul.mubr.msk.bf16.vlgmr.msra.gmra.mrb[8].mxu1 %vm99_vm4, %v343_v56 }
 0x44b   :  { %2006 = vmatpush3.bf16.msra.mxu1 %v2307_v35  ;;  %2009 = vmatprep.mubr.msk.bf16.mxu1 %vm2215_vm1, %v2214_v0 }
 0x44c   :  { %2007 = vmatprep.subr.bf16.mxu1 %v2214_v0 }
 0x44f   :  { %2008 = vmatpush3.bf16.msra.mxu1 %v2314_v36 }
 0x450   :  { %2021 = vmatprep.subr.bf16.mxu1 %v2214_v0 }
 0x51d   :  { %v398_v58 = vpop.f32.mrb[8].mxu1 }
 0x51e   :  { %v399_v59 = vadd.f32 %v2356_v57, %v398_v58  ;;  %v1997_v60 = vpop.f32.mrb[9].mxu1 }
 0x51f   :  { %v401_v61 = vpop.f32.mrb[10].mxu1 }
 0x520   :  { %2196 = vtanh.f32 %v399_v59  ;;  %v1998_v62 = vpop.f32.mrb[11].mxu1 }
 0x52a   :  { %v2197_v1 = vpop.eup %2196 }
 0x52b   :  { %v405_v2 = vmul.f32 %v2197_v1, %v1819_v63 }
 0x52d   :  { %415 = vrot.lane.b32.xlu1 %v405_v2, %s2216_s25  ;;  %407 = vrot.lane.b32.xlu0 %v405_v2, %s2217_s26 }
 0x531   :  { %411 = vrot.lane.b32.xlu0 %v405_v2, %s2218_s27 }
 0x59f   :  { %v408_v3 = vpop.permute.xlu0 %407  ;;  %v416_v8 = vpop.permute.xlu1 %415 }
 0x5a0   :  { %v410_v4 = vadd.f32 %v408_v3, %v405_v2 }
 0x5a3   :  { %v412_v5 = vpop.permute.xlu0 %411 }
 0x5a4   :  { %v414_v7 = vadd.f32 %v412_v5, %v410_v4 }
 0x5a6   :  { %v418_v9 = vadd.f32 %v416_v8, %v414_v7 }
 0x5a8   :  { %v425_v11 = vmul.f32 0.5, %v418_v9 }
 0x5aa   :  { %v2367_v12 = vadd.f32 %v425_v11, %v424_v10 }
 0x5ac   :  { %v427_v13 = vpack.c.bf16 %v2367_v12, %v2367_v12 }
 0x5ae   :  { %2002 = vmatmul.mubr.msk.bf16.vlgmr.msra.gmra.mrb[12].mxu0 %vm223_vm6, %v427_v13 }
 0x5af   :  { %2014 = vmatpush3.bf16.msra.mxu0 %v2329_v46  ;;  %2017 = vmatprep.mubr.msk.bf16.mxu0 %vm2215_vm1, %v2214_v0 }
 0x5b0   :  { %2015 = vmatprep.subr.bf16.mxu0 %v2214_v0 }
 0x5b3   :  { %2016 = vmatpush3.bf16.msra.mxu0 %v2336_v47 }
 0x5b4   :  { %2027 = vmatprep.subr.bf16.mxu0 %v2214_v0 }
 0x681   :  { %v465_v15 = vpop.f32.mrb[12].mxu0 }
 0x682   :  { %v471_v16 = vadd.f32 %v1831_v14, %v465_v15  ;;  %v2003_v17 = vpop.f32.mrb[13].mxu0 }
 0x683   :  { %v468_v19 = vpop.f32.mrb[14].mxu0 }
 0x684   :  { %vm472_vm9 = vcmp.gt.f32.partialorder %v471_v16, 0.0  ;;  %v473_v20 = vmul.f32 0.01, %v471_v16  ;;  %v2004_v21 = vpop.f32.mrb[15].mxu0 }
 0x685   :  { %v1835_v21 = vld [vmem:[%s2675_s3 + $0x6] sm:$0x3] }
 0x686   :  { %v474_v22 = vsel %vm472_vm9, %v471_v16, %v473_v20 }
 0x687   :  { %v475_v23 = vpack.c.bf16 %v474_v22, %v474_v22 }
 0x689   :  { %2010 = vmatmul.mubr.msk.bf16.vlgmr.msra.gmra.mrb[12].mxu1 %vm99_vm4, %v475_v23 }
 0x68a   :  { %2022 = vmatpush3.bf16.msra.mxu1 %v2284_v18  ;;  %2023 = vmatprep.mubr.msk.bf16.mxu1 %vm2215_vm1, %v2214_v0 }
 0x68b   :  { %2035 = vmatprep.subr.bf16.mxu1 %v2214_v0 }
 0x75c   :  { %v513_v24 = vpop.f32.mrb[12].mxu1 }
 0x75d   :  { %v514_v25 = vadd.f32 %v2343_v48, %v513_v24  ;;  %v2011_v26 = vpop.f32.mrb[13].mxu1 }
 0x75e   :  { %v516_v27 = vpop.f32.mrb[14].mxu1 }
 0x75f   :  { %vm519_vm10 = vcmp.gt.f32.partialorder %v514_v25, 0.0  ;;  %v520_v28 = vmul.f32 0.01, %v514_v25  ;;  %v2012_v29 = vpop.f32.mrb[15].mxu1 }
 0x761   :  { %v521_v31 = vsel %vm519_vm10, %v514_v25, %v520_v28 }
 0x762   :  { %v522_v32 = vpack.c.bf16 %v521_v31, %v521_v31 }
 0x764   :  { %2018 = vmatmul.mubr.msk.bf16.vlgmr.msra.gmra.mrb[16].mxu0 %vm99_vm4, %v522_v32 }
 0x765   :  { %2028 = vmatpush3.bf16.msra.mxu0 %v2307_v35  ;;  %2031 = vmatprep.mubr.msk.bf16.mxu0 %vm2215_vm1, %v2214_v0 }
 0x766   :  { %2029 = vmatprep.subr.bf16.mxu0 %v2214_v0 }
 0x769   :  { %2030 = vmatpush3.bf16.msra.mxu0 %v2314_v36 }
 0x76a   :  { %2043 = vmatprep.subr.bf16.mxu0 %v2214_v0 }
 0x837   :  { %v560_v33 = vpop.f32.mrb[16].mxu0 }
 0x838   :  { %v561_v34 = vadd.f32 %v2356_v57, %v560_v33  ;;  %v2019_v37 = vpop.f32.mrb[17].mxu0 }
 0x839   :  { %v563_v38 = vpop.f32.mrb[18].mxu0 }
 0x83a   :  { %2198 = vtanh.f32 %v561_v34  ;;  %v2020_v39 = vpop.f32.mrb[19].mxu0 }
 0x844   :  { %v2199_v41 = vpop.eup %2198 }
 0x845   :  { %v567_v42 = vmul.f32 %v2199_v41, %v1830_v40 }
 0x847   :  { %573 = vrot.lane.b32.xlu0 %v567_v42, %s2218_s27  ;;  %569 = vrot.lane.b32.xlu1 %v567_v42, %s2217_s26 }
 0x84b   :  { %577 = vrot.lane.b32.xlu1 %v567_v42, %s2216_s25 }
 0x8b9   :  { %v570_v43 = vpop.permute.xlu1 %569  ;;  %v574_v45 = vpop.permute.xlu0 %573 }
 0x8ba   :  { %v572_v44 = vadd.f32 %v570_v43, %v567_v42  ;;  %v1841_v42 = vld [vmem:[%s2677_s2 + $0x6] sm:$0x3] }
 0x8bc   :  { %v576_v49 = vadd.f32 %v574_v45, %v572_v44 }
 0x8bd   :  { %v578_v50 = vpop.permute.xlu1 %577 }
 0x8be   :  { %v2401_v51 = vadd.f32 %v578_v50, %v576_v49 }
 0x8c0   :  { %v581_v52 = vadd.f32 %v2401_v51, %v418_v9  ;;  %v591_v59 = vmul.f32 0.5, %v2401_v51 }
 0x8c2   :  { %v582_v53 = vmul.f32 0.5, %v581_v52 }
 0x8c4   :  { %v583_v54 = vmul.f32 0.5, %v582_v53 }
 0x8c6   :  { %v584_v55 = vadd.f32 %v583_v54, %v2297_v30  ;;  %v1836_v30 = vld [vmem:[%s2677_s2 + $0x4] sm:$0x3] }
 0x8c8   :  { %v589_v56 = vmul.f32 2.0, %v584_v55 }
 0x8ca   :  { %v590_v58 = vsub.f32 %v589_v56, %v2367_v12 }
 0x8cc   :  { %v2407_v60 = vadd.f32 %v591_v59, %v590_v58 }
 0x8ce   :  { %v593_v61 = vpack.c.bf16 %v2407_v60, %v2407_v60 }
 0x8d0   :  { %2024 = vmatmul.mubr.msk.bf16.vlgmr.msra.gmra.mrb[16].mxu1 %vm223_vm6, %v593_v61 }
 0x8d1   :  { %2036 = vmatpush3.bf16.msra.mxu1 %v2329_v46  ;;  %2039 = vmatprep.mubr.msk.bf16.mxu1 %vm2215_vm1, %v2214_v0 }
 0x8d2   :  { %2037 = vmatprep.subr.bf16.mxu1 %v2214_v0 }
 0x8d5   :  { %2038 = vmatpush3.bf16.msra.mxu1 %v2336_v47 }
 0x8d6   :  { %2049 = vmatprep.subr.bf16.mxu1 %v2214_v0 }
 0x9a3   :  { %v631_v62 = vpop.f32.mrb[16].mxu1 }
 0x9a4   :  { %v637_v63 = vadd.f32 %v1836_v30, %v631_v62  ;;  %v2025_v1 = vpop.f32.mrb[17].mxu1 }
 0x9a5   :  { %v634_v2 = vpop.f32.mrb[18].mxu1 }
 0x9a6   :  { %vm638_vm11 = vcmp.gt.f32.partialorder %v637_v63, 0.0  ;;  %v639_v3 = vmul.f32 0.01, %v637_v63  ;;  %v2026_v4 = vpop.f32.mrb[19].mxu1 }
 0x9a7   :  { %v1840_v4 = vld [vmem:[%s2675_s3 + $0x8] sm:$0x3] }
 0x9a8   :  { %v640_v5 = vsel %vm638_vm11, %v637_v63, %v639_v3 }
 0x9a9   :  { %v641_v6 = vpack.c.bf16 %v640_v5, %v640_v5 }
 0x9ab   :  { %2032 = vmatmul.mubr.msk.bf16.vlgmr.msra.gmra.mrb[20].mxu0 %vm99_vm4, %v641_v6 }
 0x9ac   :  { %2044 = vmatpush3.bf16.msra.mxu0 %v2284_v18  ;;  %2045 = vmatprep.mubr.msk.bf16.mxu0 %vm2215_vm1, %v2214_v0 }
 0x9ad   :  { %2057 = vmatprep.subr.bf16.mxu0 %v2214_v0 }
 0xa7e   :  { %v679_v7 = vpop.f32.mrb[20].mxu0 }
 0xa7f   :  { %v680_v8 = vadd.f32 %v2343_v48, %v679_v7  ;;  %v2033_v9 = vpop.f32.mrb[21].mxu0 }
 0xa80   :  { %v682_v10 = vpop.f32.mrb[22].mxu0 }
 0xa81   :  { %vm685_vm12 = vcmp.gt.f32.partialorder %v680_v8, 0.0  ;;  %v686_v11 = vmul.f32 0.01, %v680_v8  ;;  %v2034_v12 = vpop.f32.mrb[23].mxu0 }
 0xa83   :  { %v687_v13 = vsel %vm685_vm12, %v680_v8, %v686_v11 }
 0xa84   :  { %v688_v14 = vpack.c.bf16 %v687_v13, %v687_v13 }
 0xa86   :  { %2040 = vmatmul.mubr.msk.bf16.vlgmr.msra.gmra.mrb[20].mxu1 %vm99_vm4, %v688_v14 }
 0xa87   :  { %2050 = vmatpush3.bf16.msra.mxu1 %v2307_v35  ;;  %2053 = vmatprep.mubr.msk.bf16.mxu1 %vm2215_vm1, %v2214_v0 }
 0xa88   :  { %2051 = vmatprep.subr.bf16.mxu1 %v2214_v0 }
 0xa8b   :  { %2052 = vmatpush3.bf16.msra.mxu1 %v2314_v36 }
 0xa8c   :  { %2065 = vmatprep.subr.bf16.mxu1 %v2214_v0 }
 0xb59   :  { %v726_v15 = vpop.f32.mrb[20].mxu1 }
 0xb5a   :  { %v727_v16 = vadd.f32 %v2356_v57, %v726_v15  ;;  %v2041_v17 = vpop.f32.mrb[21].mxu1 }
 0xb5b   :  { %v729_v19 = vpop.f32.mrb[22].mxu1 }
 0xb5c   :  { %2200 = vtanh.f32 %v727_v16  ;;  %v2042_v20 = vpop.f32.mrb[23].mxu1 }
 0xb66   :  { %v2201_v22 = vpop.eup %2200 }
 0xb67   :  { %v733_v23 = vmul.f32 %v2201_v22, %v1835_v21 }
 0xb69   :  { %739 = vrot.lane.b32.xlu1 %v733_v23, %s2218_s27  ;;  %735 = vrot.lane.b32.xlu0 %v733_v23, %s2217_s26 }
 0xb6d   :  { %743 = vrot.lane.b32.xlu0 %v733_v23, %s2216_s25 }
 0xbdb   :  { %v736_v24 = vpop.permute.xlu0 %735  ;;  %v740_v26 = vpop.permute.xlu1 %739 }
 0xbdc   :  { %v738_v25 = vadd.f32 %v736_v24, %v733_v23  ;;  %v1846_v23 = vld [vmem:[%s2677_s2 + $0x8] sm:$0x3] }
 0xbde   :  { %v742_v27 = vadd.f32 %v740_v26, %v738_v25 }
 0xbdf   :  { %v744_v28 = vpop.permute.xlu0 %743 }
 0xbe0   :  { %v2441_v29 = vadd.f32 %v744_v28, %v742_v27 }
 0xbe2   :  { %v747_v31 = vadd.f32 %v2441_v29, %v2401_v51  ;;  %v757_v39 = vmul.f32 0.5, %v2441_v29 }
 0xbe4   :  { %v748_v32 = vmul.f32 0.5, %v747_v31 }
 0xbe6   :  { %v749_v33 = vmul.f32 0.5, %v748_v32 }
 0xbe8   :  { %v750_v34 = vadd.f32 %v749_v33, %v584_v55 }
 0xbea   :  { %v755_v37 = vmul.f32 2.0, %v750_v34 }
 0xbec   :  { %v756_v38 = vsub.f32 %v755_v37, %v2407_v60 }
 0xbee   :  { %v2447_v40 = vadd.f32 %v757_v39, %v756_v38 }
 0xbf0   :  { %v759_v41 = vpack.c.bf16 %v2447_v40, %v2447_v40 }
 0xbf2   :  { %2046 = vmatmul.mubr.msk.bf16.vlgmr.msra.gmra.mrb[24].mxu0 %vm223_vm6, %v759_v41 }
 0xbf3   :  { %2058 = vmatpush3.bf16.msra.mxu0 %v2329_v46  ;;  %2061 = vmatprep.mubr.msk.bf16.mxu0 %vm2215_vm1, %v2214_v0 }
 0xbf4   :  { %2059 = vmatprep.subr.bf16.mxu0 %v2214_v0 }
 0xbf7   :  { %2060 = vmatpush3.bf16.msra.mxu0 %v2336_v47 }
 0xbf8   :  { %2071 = vmatprep.subr.bf16.mxu0 %v2214_v0 }
 0xcc5   :  { %v797_v43 = vpop.f32.mrb[24].mxu0 }
 0xcc6   :  { %v803_v44 = vadd.f32 %v1841_v42, %v797_v43  ;;  %v2047_v45 = vpop.f32.mrb[25].mxu0 }
 0xcc7   :  { %v800_v49 = vpop.f32.mrb[26].mxu0 }
 0xcc8   :  { %vm804_vm13 = vcmp.gt.f32.partialorder %v803_v44, 0.0  ;;  %v805_v50 = vmul.f32 0.01, %v803_v44  ;;  %v2048_v51 = vpop.f32.mrb[27].mxu0 }
 0xcc9   :  { %v1845_v51 = vld [vmem:[%s2675_s3 + $0xa] sm:$0x3] }
 0xcca   :  { %v806_v52 = vsel %vm804_vm13, %v803_v44, %v805_v50 }
 0xccb   :  { %v807_v53 = vpack.c.bf16 %v806_v52, %v806_v52 }
 0xccd   :  { %2054 = vmatmul.mubr.msk.bf16.vlgmr.msra.gmra.mrb[24].mxu1 %vm99_vm4, %v807_v53 }
 0xcce   :  { %2066 = vmatpush3.bf16.msra.mxu1 %v2284_v18  ;;  %2067 = vmatprep.mubr.msk.bf16.mxu1 %vm2215_vm1, %v2214_v0 }
 0xccf   :  { %2079 = vmatprep.subr.bf16.mxu1 %v2214_v0 }
 0xda0   :  { %v845_v54 = vpop.f32.mrb[24].mxu1 }
 0xda1   :  { %v846_v55 = vadd.f32 %v2343_v48, %v845_v54  ;;  %v2055_v56 = vpop.f32.mrb[25].mxu1 }
 0xda2   :  { %v848_v58 = vpop.f32.mrb[26].mxu1 }
 0xda3   :  { %vm851_vm14 = vcmp.gt.f32.partialorder %v846_v55, 0.0  ;;  %v852_v59 = vmul.f32 0.01, %v846_v55  ;;  %v2056_v60 = vpop.f32.mrb[27].mxu1 }
 0xda5   :  { %v853_v61 = vsel %vm851_vm14, %v846_v55, %v852_v59 }
 0xda6   :  { %v854_v30 = vpack.c.bf16 %v853_v61, %v853_v61 }
 0xda8   :  { %2062 = vmatmul.mubr.msk.bf16.vlgmr.msra.gmra.mrb[28].mxu0 %vm99_vm4, %v854_v30 }
 0xda9   :  { %2072 = vmatpush3.bf16.msra.mxu0 %v2307_v35  ;;  %2075 = vmatprep.mubr.msk.bf16.mxu0 %vm2215_vm1, %v2214_v0 }
 0xdaa   :  { %2073 = vmatprep.subr.bf16.mxu0 %v2214_v0 }
 0xdad   :  { %2074 = vmatpush3.bf16.msra.mxu0 %v2314_v36 }
 0xdae   :  { %2087 = vmatprep.subr.bf16.mxu0 %v2214_v0 }
 0xe7b   :  { %v892_v62 = vpop.f32.mrb[28].mxu0 }
 0xe7c   :  { %v893_v63 = vadd.f32 %v2356_v57, %v892_v62  ;;  %v2063_v1 = vpop.f32.mrb[29].mxu0 }
 0xe7d   :  { %v895_v2 = vpop.f32.mrb[30].mxu0 }
 0xe7e   :  { %2202 = vtanh.f32 %v893_v63  ;;  %v2064_v3 = vpop.f32.mrb[31].mxu0 }
 0xe88   :  { %v2203_v5 = vpop.eup %2202 }
 0xe89   :  { %v899_v6 = vmul.f32 %v2203_v5, %v1840_v4 }
 0xe8b   :  { %905 = vrot.lane.b32.xlu0 %v899_v6, %s2218_s27  ;;  %901 = vrot.lane.b32.xlu1 %v899_v6, %s2217_s26 }
 0xe8f   :  { %909 = vrot.lane.b32.xlu1 %v899_v6, %s2216_s25 }
 0xefd   :  { %v902_v7 = vpop.permute.xlu1 %901  ;;  %v906_v9 = vpop.permute.xlu0 %905 }
 0xefe   :  { %v904_v8 = vadd.f32 %v902_v7, %v899_v6  ;;  %v1851_v6 = vld [vmem:[%s2677_s2 + $0xa] sm:$0x3] }
 0xf00   :  { %v908_v10 = vadd.f32 %v906_v9, %v904_v8 }
 0xf01   :  { %v910_v11 = vpop.permute.xlu1 %909 }
 0xf02   :  { %v2481_v12 = vadd.f32 %v910_v11, %v908_v10 }
 0xf04   :  { %v913_v13 = vadd.f32 %v2481_v12, %v2441_v29  ;;  %v923_v20 = vmul.f32 0.5, %v2481_v12 }
 0xf06   :  { %v914_v14 = vmul.f32 0.5, %v913_v13 }
 0xf08   :  { %v915_v15 = vmul.f32 0.5, %v914_v14 }
 0xf0a   :  { %v916_v16 = vadd.f32 %v915_v15, %v750_v34 }
 0xf0c   :  { %v921_v17 = vmul.f32 2.0, %v916_v16 }
 0xf0e   :  { %v922_v19 = vsub.f32 %v921_v17, %v2447_v40 }
 0xf10   :  { %v2487_v21 = vadd.f32 %v923_v20, %v922_v19 }
 0xf12   :  { %v925_v22 = vpack.c.bf16 %v2487_v21, %v2487_v21 }
 0xf14   :  { %2068 = vmatmul.mubr.msk.bf16.vlgmr.msra.gmra.mrb[28].mxu1 %vm223_vm6, %v925_v22 }
 0xf15   :  { %2080 = vmatpush3.bf16.msra.mxu1 %v2329_v46  ;;  %2083 = vmatprep.mubr.msk.bf16.mxu1 %vm2215_vm1, %v2214_v0 }
 0xf16   :  { %2081 = vmatprep.subr.bf16.mxu1 %v2214_v0 }
 0xf19   :  { %2082 = vmatpush3.bf16.msra.mxu1 %v2336_v47 }
 0xf1a   :  { %2093 = vmatprep.subr.bf16.mxu1 %v2214_v0 }
 0xfe7   :  { %v963_v24 = vpop.f32.mrb[28].mxu1 }
 0xfe8   :  { %v969_v25 = vadd.f32 %v1846_v23, %v963_v24  ;;  %v2069_v26 = vpop.f32.mrb[29].mxu1 }
 0xfe9   :  { %v966_v27 = vpop.f32.mrb[30].mxu1 }
 0xfea   :  { %vm970_vm15 = vcmp.gt.f32.partialorder %v969_v25, 0.0  ;;  %v971_v28 = vmul.f32 0.01, %v969_v25  ;;  %v2070_v29 = vpop.f32.mrb[31].mxu1 }
 0xfeb   :  { %v1850_v29 = vld [vmem:[%s2675_s3 + $0xc] sm:$0x3] }
 0xfec   :  { %v972_v31 = vsel %vm970_vm15, %v969_v25, %v971_v28 }
 0xfed   :  { %v973_v32 = vpack.c.bf16 %v972_v31, %v972_v31 }
 0xfef   :  { %2076 = vmatmul.mubr.msk.bf16.vlgmr.msra.gmra.mrb[32].mxu0 %vm99_vm4, %v973_v32 }
 0xff0   :  { %2088 = vmatpush3.bf16.msra.mxu0 %v2284_v18  ;;  %2089 = vmatprep.mubr.msk.bf16.mxu0 %vm2215_vm1, %v2214_v0 }
 0xff1   :  { %2101 = vmatprep.subr.bf16.mxu0 %v2214_v0 }
0x10c2   :  { %v1011_v33 = vpop.f32.mrb[32].mxu0 }
0x10c3   :  { %v1012_v34 = vadd.f32 %v2343_v48, %v1011_v33  ;;  %v2077_v37 = vpop.f32.mrb[33].mxu0 }
0x10c4   :  { %v1014_v38 = vpop.f32.mrb[34].mxu0 }
0x10c5   :  { %vm1017_vm0 = vcmp.gt.f32.partialorder %v1012_v34, 0.0  ;;  %v1018_v39 = vmul.f32 0.01, %v1012_v34  ;;  %v2078_v40 = vpop.f32.mrb[35].mxu0 }
0x10c7   :  { %v1019_v41 = vsel %vm1017_vm0, %v1012_v34, %v1018_v39 }
0x10c8   :  { %v1020_v42 = vpack.c.bf16 %v1019_v41, %v1019_v41 }
0x10ca   :  { %2084 = vmatmul.mubr.msk.bf16.vlgmr.msra.gmra.mrb[32].mxu1 %vm99_vm4, %v1020_v42 }
0x10cb   :  { %2094 = vmatpush3.bf16.msra.mxu1 %v2307_v35  ;;  %2097 = vmatprep.mubr.msk.bf16.mxu1 %vm2215_vm1, %v2214_v0 }
0x10cc   :  { %2095 = vmatprep.subr.bf16.mxu1 %v2214_v0 }
0x10cf   :  { %2096 = vmatpush3.bf16.msra.mxu1 %v2314_v36 }
0x10d0   :  { %2109 = vmatprep.subr.bf16.mxu1 %v2214_v0 }
0x119d   :  { %v1058_v43 = vpop.f32.mrb[32].mxu1 }
0x119e   :  { %v1059_v44 = vadd.f32 %v2356_v57, %v1058_v43  ;;  %v2085_v45 = vpop.f32.mrb[33].mxu1 }
0x119f   :  { %v1061_v49 = vpop.f32.mrb[34].mxu1 }
0x11a0   :  { %2204 = vtanh.f32 %v1059_v44  ;;  %v2086_v50 = vpop.f32.mrb[35].mxu1 }
0x11aa   :  { %v2205_v52 = vpop.eup %2204 }
0x11ab   :  { %v1065_v53 = vmul.f32 %v2205_v52, %v1845_v51 }
0x11ad   :  { %1071 = vrot.lane.b32.xlu1 %v1065_v53, %s2218_s27  ;;  %1067 = vrot.lane.b32.xlu0 %v1065_v53, %s2217_s26 }
0x11b1   :  { %1075 = vrot.lane.b32.xlu0 %v1065_v53, %s2216_s25 }
0x121f   :  { %v1068_v54 = vpop.permute.xlu0 %1067  ;;  %v1072_v56 = vpop.permute.xlu1 %1071 }
0x1220   :  { %v1070_v55 = vadd.f32 %v1068_v54, %v1065_v53  ;;  %v1856_v53 = vld [vmem:[%s2677_s2 + $0xc] sm:$0x3] }
0x1222   :  { %v1074_v58 = vadd.f32 %v1072_v56, %v1070_v55 }
0x1223   :  { %v1076_v59 = vpop.permute.xlu0 %1075 }
0x1224   :  { %v2521_v60 = vadd.f32 %v1076_v59, %v1074_v58 }
0x1226   :  { %v1079_v61 = vadd.f32 %v2521_v60, %v2481_v12  ;;  %v1089_v3 = vmul.f32 0.5, %v2521_v60 }
0x1228   :  { %v1080_v30 = vmul.f32 0.5, %v1079_v61 }
0x122a   :  { %v1081_v62 = vmul.f32 0.5, %v1080_v30 }
0x122c   :  { %v1082_v63 = vadd.f32 %v1081_v62, %v916_v16 }
0x122e   :  { %v1087_v1 = vmul.f32 2.0, %v1082_v63 }
0x1230   :  { %v1088_v2 = vsub.f32 %v1087_v1, %v2487_v21 }
0x1232   :  { %v2527_v4 = vadd.f32 %v1089_v3, %v1088_v2 }
0x1234   :  { %v1091_v5 = vpack.c.bf16 %v2527_v4, %v2527_v4 }
0x1236   :  { %2090 = vmatmul.mubr.msk.bf16.vlgmr.msra.gmra.mrb[36].mxu0 %vm223_vm6, %v1091_v5 }
0x1237   :  { %2102 = vmatpush3.bf16.msra.mxu0 %v2329_v46  ;;  %2105 = vmatprep.mubr.msk.bf16.mxu0 %vm2215_vm1, %v2214_v0 }
0x1238   :  { %2103 = vmatprep.subr.bf16.mxu0 %v2214_v0 }
0x123b   :  { %2104 = vmatpush3.bf16.msra.mxu0 %v2336_v47 }
0x123c   :  { %2115 = vmatprep.subr.bf16.mxu0 %v2214_v0 }
0x1309   :  { %v1129_v7 = vpop.f32.mrb[36].mxu0 }
0x130a   :  { %v1135_v8 = vadd.f32 %v1851_v6, %v1129_v7  ;;  %v2091_v9 = vpop.f32.mrb[37].mxu0 }
0x130b   :  { %v1132_v10 = vpop.f32.mrb[38].mxu0 }
0x130c   :  { %vm1136_vm2 = vcmp.gt.f32.partialorder %v1135_v8, 0.0  ;;  %v1137_v11 = vmul.f32 0.01, %v1135_v8  ;;  %v2092_v12 = vpop.f32.mrb[39].mxu0 }
0x130d   :  { %v1855_v12 = vld [vmem:[%s2675_s3 + $0xe] sm:$0x3] }
0x130e   :  { %v1138_v13 = vsel %vm1136_vm2, %v1135_v8, %v1137_v11 }
0x130f   :  { %v1139_v14 = vpack.c.bf16 %v1138_v13, %v1138_v13 }
0x1311   :  { %2098 = vmatmul.mubr.msk.bf16.vlgmr.msra.gmra.mrb[36].mxu1 %vm99_vm4, %v1139_v14 }
0x1312   :  { %2110 = vmatpush3.bf16.msra.mxu1 %v2284_v18  ;;  %2111 = vmatprep.mubr.msk.bf16.mxu1 %vm2215_vm1, %v2214_v0 }
0x1313   :  { %2123 = vmatprep.subr.bf16.mxu1 %v2214_v0 }
0x13e4   :  { %v1177_v15 = vpop.f32.mrb[36].mxu1 }
0x13e5   :  { %v1178_v16 = vadd.f32 %v2343_v48, %v1177_v15  ;;  %v2099_v17 = vpop.f32.mrb[37].mxu1 }
0x13e6   :  { %v1180_v19 = vpop.f32.mrb[38].mxu1 }
0x13e7   :  { %vm1183_vm3 = vcmp.gt.f32.partialorder %v1178_v16, 0.0  ;;  %v1184_v20 = vmul.f32 0.01, %v1178_v16  ;;  %v2100_v21 = vpop.f32.mrb[39].mxu1 }
0x13e9   :  { %v1185_v22 = vsel %vm1183_vm3, %v1178_v16, %v1184_v20 }
0x13ea   :  { %v1186_v23 = vpack.c.bf16 %v1185_v22, %v1185_v22 }
0x13ec   :  { %2106 = vmatmul.mubr.msk.bf16.vlgmr.msra.gmra.mrb[40].mxu0 %vm99_vm4, %v1186_v23 }
0x13ed   :  { %2116 = vmatpush3.bf16.msra.mxu0 %v2307_v35  ;;  %2119 = vmatprep.mubr.msk.bf16.mxu0 %vm2215_vm1, %v2214_v0 }
0x13ee   :  { %2117 = vmatprep.subr.bf16.mxu0 %v2214_v0 }
0x13f1   :  { %2118 = vmatpush3.bf16.msra.mxu0 %v2314_v36 }
0x13f2   :  { %2131 = vmatprep.subr.bf16.mxu0 %v2214_v0 }
0x14bf   :  { %v1224_v24 = vpop.f32.mrb[40].mxu0 }
0x14c0   :  { %v1225_v25 = vadd.f32 %v2356_v57, %v1224_v24  ;;  %v2107_v26 = vpop.f32.mrb[41].mxu0 }
0x14c1   :  { %v1227_v27 = vpop.f32.mrb[42].mxu0 }
0x14c2   :  { %2206 = vtanh.f32 %v1225_v25  ;;  %v2108_v28 = vpop.f32.mrb[43].mxu0 }
0x14cc   :  { %v2207_v31 = vpop.eup %2206 }
0x14cd   :  { %v1231_v32 = vmul.f32 %v2207_v31, %v1850_v29 }
0x14cf   :  { %1237 = vrot.lane.b32.xlu0 %v1231_v32, %s2218_s27  ;;  %1233 = vrot.lane.b32.xlu1 %v1231_v32, %s2217_s26 }
0x14d3   :  { %1241 = vrot.lane.b32.xlu1 %v1231_v32, %s2216_s25 }
0x1541   :  { %v1234_v33 = vpop.permute.xlu1 %1233  ;;  %v1238_v37 = vpop.permute.xlu0 %1237 }
0x1542   :  { %v1236_v34 = vadd.f32 %v1234_v33, %v1231_v32  ;;  %v1861_v32 = vld [vmem:[%s2677_s2 + $0xe] sm:$0x3] }
0x1544   :  { %v1240_v38 = vadd.f32 %v1238_v37, %v1236_v34 }
0x1545   :  { %v1242_v39 = vpop.permute.xlu1 %1241 }
0x1546   :  { %v2561_v40 = vadd.f32 %v1242_v39, %v1240_v38 }
0x1548   :  { %v1245_v41 = vadd.f32 %v2561_v40, %v2521_v60  ;;  %v1255_v50 = vmul.f32 0.5, %v2561_v40 }
0x154a   :  { %v1246_v42 = vmul.f32 0.5, %v1245_v41 }
0x154c   :  { %v1247_v43 = vmul.f32 0.5, %v1246_v42 }
0x154e   :  { %v1248_v44 = vadd.f32 %v1247_v43, %v1082_v63 }
0x1550   :  { %v1253_v45 = vmul.f32 2.0, %v1248_v44 }
0x1552   :  { %v1254_v49 = vsub.f32 %v1253_v45, %v2527_v4 }
0x1554   :  { %v2567_v51 = vadd.f32 %v1255_v50, %v1254_v49 }
0x1556   :  { %v1257_v52 = vpack.c.bf16 %v2567_v51, %v2567_v51 }
0x1558   :  { %2112 = vmatmul.mubr.msk.bf16.vlgmr.msra.gmra.mrb[40].mxu1 %vm223_vm6, %v1257_v52 }
0x1559   :  { %2124 = vmatpush3.bf16.msra.mxu1 %v2329_v46  ;;  %2127 = vmatprep.mubr.msk.bf16.mxu1 %vm2215_vm1, %v2214_v0 }
0x155a   :  { %2125 = vmatprep.subr.bf16.mxu1 %v2214_v0 }
0x155d   :  { %2126 = vmatpush3.bf16.msra.mxu1 %v2336_v47 }
0x155e   :  { %2137 = vmatprep.subr.bf16.mxu1 %v2214_v0 }
0x162b   :  { %v1295_v54 = vpop.f32.mrb[40].mxu1 }
0x162c   :  { %v1301_v55 = vadd.f32 %v1856_v53, %v1295_v54  ;;  %v2113_v56 = vpop.f32.mrb[41].mxu1 }
0x162d   :  { %v1298_v58 = vpop.f32.mrb[42].mxu1 }
0x162e   :  { %vm1302_vm5 = vcmp.gt.f32.partialorder %v1301_v55, 0.0  ;;  %v1303_v59 = vmul.f32 0.01, %v1301_v55  ;;  %v2114_v60 = vpop.f32.mrb[43].mxu1 }
0x1630   :  { %v1304_v61 = vsel %vm1302_vm5, %v1301_v55, %v1303_v59 }
0x1631   :  { %v1305_v30 = vpack.c.bf16 %v1304_v61, %v1304_v61 }
0x1633   :  { %2120 = vmatmul.mubr.msk.bf16.vlgmr.msra.gmra.mrb[44].mxu0 %vm99_vm4, %v1305_v30 }
0x1634   :  { %2132 = vmatpush3.bf16.msra.mxu0 %v2284_v18  ;;  %2133 = vmatprep.mubr.msk.bf16.mxu0 %vm2215_vm1, %v2214_v0 }
0x1635   :  { %2145 = vmatprep.subr.bf16.mxu0 %v2214_v0 }
0x1706   :  { %v1343_v62 = vpop.f32.mrb[44].mxu0 }
0x1707   :  { %v1344_v63 = vadd.f32 %v2343_v48, %v1343_v62  ;;  %v2121_v1 = vpop.f32.mrb[45].mxu0 }
0x1708   :  { %v1346_v2 = vpop.f32.mrb[46].mxu0 }
0x1709   :  { %vm1349_vm7 = vcmp.gt.f32.partialorder %v1344_v63, 0.0  ;;  %v1350_v3 = vmul.f32 0.01, %v1344_v63  ;;  %v2122_v4 = vpop.f32.mrb[47].mxu0 }
0x170b   :  { %v1351_v5 = vsel %vm1349_vm7, %v1344_v63, %v1350_v3 }
0x170c   :  { %v1352_v6 = vpack.c.bf16 %v1351_v5, %v1351_v5 }
0x170e   :  { %2128 = vmatmul.mubr.msk.bf16.vlgmr.msra.gmra.mrb[44].mxu1 %vm99_vm4, %v1352_v6 }
0x170f   :  { %2138 = vmatpush3.bf16.msra.mxu1 %v2307_v35  ;;  %2141 = vmatprep.mubr.msk.bf16.mxu1 %vm2215_vm1, %v2214_v0 }
0x1710   :  { %2139 = vmatprep.subr.bf16.mxu1 %v2214_v0 }
0x1713   :  { %2140 = vmatpush3.bf16.msra.mxu1 %v2314_v36 }
0x1714   :  { %2153 = vmatprep.subr.bf16.mxu1 %v2214_v0 }
0x17e1   :  { %v1390_v7 = vpop.f32.mrb[44].mxu1 }
0x17e2   :  { %v1391_v8 = vadd.f32 %v2356_v57, %v1390_v7  ;;  %v2129_v9 = vpop.f32.mrb[45].mxu1 }
0x17e3   :  { %v1393_v10 = vpop.f32.mrb[46].mxu1 }
0x17e4   :  { %2208 = vtanh.f32 %v1391_v8  ;;  %v2130_v11 = vpop.f32.mrb[47].mxu1 }
0x17e5   :  { %v1866_v11 = vld [vmem:[%s2677_s2 + $0x10] sm:$0x3] }
0x17ee   :  { %v2209_v13 = vpop.eup %2208 }
0x17ef   :  { %v1397_v14 = vmul.f32 %v2209_v13, %v1855_v12 }
0x17f1   :  { %1403 = vrot.lane.b32.xlu1 %v1397_v14, %s2218_s27  ;;  %1399 = vrot.lane.b32.xlu0 %v1397_v14, %s2217_s26 }
0x17f5   :  { %1407 = vrot.lane.b32.xlu0 %v1397_v14, %s2216_s25 }
0x1863   :  { %v1400_v15 = vpop.permute.xlu0 %1399  ;;  %v1404_v17 = vpop.permute.xlu1 %1403 }
0x1864   :  { %v1402_v16 = vadd.f32 %v1400_v15, %v1397_v14 }
0x1866   :  { %v1406_v19 = vadd.f32 %v1404_v17, %v1402_v16 }
0x1867   :  { %v1408_v20 = vpop.permute.xlu0 %1407 }
0x1868   :  { %v2601_v21 = vadd.f32 %v1408_v20, %v1406_v19 }
0x186a   :  { %v1411_v22 = vadd.f32 %v2601_v21, %v2561_v40  ;;  %v1421_v28 = vmul.f32 0.5, %v2601_v21 }
0x186c   :  { %v1412_v23 = vmul.f32 0.5, %v1411_v22 }
0x186e   :  { %v1413_v24 = vmul.f32 0.5, %v1412_v23 }
0x1870   :  { %v1414_v25 = vadd.f32 %v1413_v24, %v1248_v44 }
0x1872   :  { %v1419_v26 = vmul.f32 2.0, %v1414_v25 }
0x1874   :  { %v1420_v27 = vsub.f32 %v1419_v26, %v2567_v51 }
0x1876   :  { %v2607_v29 = vadd.f32 %v1421_v28, %v1420_v27 }
0x1878   :  { %v1423_v31 = vpack.c.bf16 %v2607_v29, %v2607_v29 }
0x187a   :  { %2134 = vmatmul.mubr.msk.bf16.vlgmr.msra.gmra.mrb[48].mxu0 %vm223_vm6, %v1423_v31 }
0x187b   :  { %2146 = vmatpush3.bf16.msra.mxu0 %v2329_v46  ;;  %2149 = vmatprep.mubr.msk.bf16.mxu0 %vm2215_vm1, %v2214_v0 }
0x187c   :  { %2147 = vmatprep.subr.bf16.mxu0 %v2214_v0 }
0x187f   :  { %2148 = vmatpush3.bf16.msra.mxu0 %v2336_v47 }
0x1880   :  { %2159 = vmatprep.subr.bf16.mxu0 %v2214_v0 }
0x194d   :  { %v1461_v33 = vpop.f32.mrb[48].mxu0 }
0x194e   :  { %v1467_v34 = vadd.f32 %v1861_v32, %v1461_v33  ;;  %v2135_v37 = vpop.f32.mrb[49].mxu0 }
0x194f   :  { %v1464_v38 = vpop.f32.mrb[50].mxu0 }
0x1950   :  { %vm1468_vm8 = vcmp.gt.f32.partialorder %v1467_v34, 0.0  ;;  %v1469_v39 = vmul.f32 0.01, %v1467_v34  ;;  %v2136_v40 = vpop.f32.mrb[51].mxu0 }
0x1952   :  { %v1470_v41 = vsel %vm1468_vm8, %v1467_v34, %v1469_v39  ;;  %v2195_v34 = vld [vmem:[%s2674_s0 + $0x50] sm:$0xff]  }
0x1953   :  { %v1471_v42 = vpack.c.bf16 %v1470_v41, %v1470_v41 }
0x1955   :  { %2142 = vmatmul.mubr.msk.bf16.vlgmr.msra.gmra.mrb[48].mxu1 %vm99_vm4, %v1471_v42 }
0x1956   :  { %2154 = vmatpush3.bf16.msra.mxu1 %v2284_v18  ;;  %2155 = vmatprep.mubr.msk.bf16.mxu1 %vm2215_vm1, %v2214_v0 }
0x1957   :  { %2167 = vmatprep.subr.bf16.mxu1 %v2214_v0 }
0x1a28   :  { %v1509_v43 = vpop.f32.mrb[48].mxu1 }
0x1a29   :  { %v1510_v44 = vadd.f32 %v2343_v48, %v1509_v43  ;;  %v2143_v45 = vpop.f32.mrb[49].mxu1 }
0x1a2a   :  { %v1512_v49 = vpop.f32.mrb[50].mxu1 }
0x1a2b   :  { %vm1515_vm9 = vcmp.gt.f32.partialorder %v1510_v44, 0.0  ;;  %v1516_v50 = vmul.f32 0.01, %v1510_v44  ;;  %v2144_v51 = vpop.f32.mrb[51].mxu1 }
0x1a2d   :  { %v1517_v52 = vsel %vm1515_vm9, %v1510_v44, %v1516_v50  ;;  %v1870_v50 = vld [vmem:[%s2676_s1 + $0x28] ss:$0 sm:$0xff] }
0x1a2e   :  { %v1518_v53 = vpack.c.bf16 %v1517_v52, %v1517_v52 }
0x1a30   :  { %2150 = vmatmul.mubr.msk.bf16.vlgmr.msra.gmra.mrb[52].mxu0 %vm99_vm4, %v1518_v53 }
0x1a31   :  { %2160 = vmatpush3.bf16.msra.mxu0 %v2307_v35  ;;  %2163 = vmatprep.mubr.msk.bf16.mxu0 %vm2215_vm1, %v2214_v0  ;;  %v1860_v35 = vld [vmem:[%s2675_s3 + $0x10] sm:$0x3] }
0x1a32   :  { %2161 = vmatprep.subr.bf16.mxu0 %v2214_v0 }
0x1a35   :  { %2162 = vmatpush3.bf16.msra.mxu0 %v2314_v36 }
0x1a36   :  { %2175 = vmatprep.subr.bf16.mxu0 %v2214_v0 }
0x1b03   :  { %v1556_v18 = vpop.f32.mrb[52].mxu0 }
0x1b04   :  { %v1557_v54 = vadd.f32 %v2356_v57, %v1556_v18  ;;  %v2151_v55 = vpop.f32.mrb[53].mxu0 }
0x1b05   :  { %v1559_v56 = vpop.f32.mrb[54].mxu0 }
0x1b06   :  { %2210 = vtanh.f32 %v1557_v54  ;;  %v2152_v58 = vpop.f32.mrb[55].mxu0 }
0x1b10   :  { %v2211_v59 = vpop.eup %2210 }
0x1b11   :  { %v1563_v60 = vmul.f32 %v2211_v59, %v1860_v35 }
0x1b13   :  { %1569 = vrot.lane.b32.xlu0 %v1563_v60, %s2218_s27  ;;  %1565 = vrot.lane.b32.xlu1 %v1563_v60, %s2217_s26 }
0x1b17   :  { %1573 = vrot.lane.b32.xlu1 %v1563_v60, %s2216_s25 }
0x1b85   :  { %v1566_v36 = vpop.permute.xlu1 %1565  ;;  %v1570_v30 = vpop.permute.xlu0 %1569 }
0x1b86   :  { %v1568_v61 = vadd.f32 %v1566_v36, %v1563_v60 }
0x1b88   :  { %v1572_v62 = vadd.f32 %v1570_v30, %v1568_v61 }
0x1b89   :  { %v1574_v63 = vpop.permute.xlu1 %1573 }
0x1b8a   :  { %v1576_v1 = vadd.f32 %v1574_v63, %v1572_v62 }
0x1b8c   :  { %v1577_v2 = vadd.f32 %v1576_v1, %v2601_v21  ;;  %v1587_v8 = vmul.f32 0.5, %v1576_v1 }
0x1b8e   :  { %v1578_v3 = vmul.f32 0.5, %v1577_v2 }
0x1b90   :  { %v1579_v4 = vmul.f32 0.5, %v1578_v3 }
0x1b92   :  { %v1580_v5 = vadd.f32 %v1579_v4, %v1414_v25 }
0x1b94   :  { %v1585_v6 = vmul.f32 2.0, %v1580_v5 }
0x1b96   :  { %v1586_v7 = vsub.f32 %v1585_v6, %v2607_v29 }
0x1b98   :  { %v1588_v9 = vadd.f32 %v1587_v8, %v1586_v7 }
0x1b9a   :  { %v1589_v10 = vpack.c.bf16 %v1588_v9, %v1588_v9 }
0x1b9c   :  { %2156 = vmatmul.mubr.msk.bf16.vlgmr.msra.gmra.mrb[52].mxu1 %vm223_vm6, %v1589_v10 }
0x1b9d   :  { %2168 = vmatpush3.bf16.msra.mxu1 %v2329_v46  ;;  %2171 = vmatprep.mubr.msk.bf16.mxu1 %vm2215_vm1, %v2214_v0 }
0x1b9e   :  { %2169 = vmatprep.subr.bf16.mxu1 %v2214_v0 }
0x1ba1   :  { %2170 = vmatpush3.bf16.msra.mxu1 %v2336_v47 }
0x1c6f   :  { %v1627_v12 = vpop.f32.mrb[52].mxu1 }
0x1c70   :  { %v1633_v13 = vadd.f32 %v1866_v11, %v1627_v12  ;;  %v2157_v14 = vpop.f32.mrb[53].mxu1 }
0x1c71   :  { %v1630_v15 = vpop.f32.mrb[54].mxu1 }
0x1c72   :  { %vm1634_vm10 = vcmp.gt.f32.partialorder %v1633_v13, 0.0  ;;  %v1635_v16 = vmul.f32 0.01, %v1633_v13  ;;  %v2158_v17 = vpop.f32.mrb[55].mxu1 }
0x1c74   :  { %v1636_v19 = vsel %vm1634_vm10, %v1633_v13, %v1635_v16 }
0x1c75   :  { %v1637_v46 = vpack.c.bf16 %v1636_v19, %v1636_v19 }
0x1c77   :  { %2164 = vmatmul.mubr.msk.bf16.vlgmr.msra.gmra.mrb[56].mxu0 %vm99_vm4, %v1637_v46 }
0x1c78   :  { %2177 = vmatprep.mubr.msk.bf16.mxu0 %vm2215_vm1, %v2214_v0  ;;  %v1865_v0 = vld [vmem:[%s2675_s3 + $0x12] sm:$0x3]  ;;  %2176 = vmatpush3.bf16.msra.mxu0 %v2195_v34 }
0x1d4a   :  { %v1675_v20 = vpop.f32.mrb[56].mxu0 }
0x1d4b   :  { %v1676_v47 = vadd.f32 %v2343_v48, %v1675_v20  ;;  %v2165_v21 = vpop.f32.mrb[57].mxu0 }
0x1d4c   :  { %v1678_v22 = vpop.f32.mrb[58].mxu0 }
0x1d4d   :  { %vm1681_vm11 = vcmp.gt.f32.partialorder %v1676_v47, 0.0  ;;  %v1682_v23 = vmul.f32 0.01, %v1676_v47  ;;  %v2166_v24 = vpop.f32.mrb[59].mxu0 }
0x1d4f   :  { %v1683_v25 = vsel %vm1681_vm11, %v1676_v47, %v1682_v23 }
0x1d50   :  { %v1684_v26 = vpack.c.bf16 %v1683_v25, %v1683_v25 }
0x1d52   :  { %2172 = vmatmul.mubr.msk.bf16.vlgmr.msra.gmra.mrb[56].mxu1 %vm99_vm4, %v1684_v26 }
0x1e25   :  { %v1722_v27 = vpop.f32.mrb[56].mxu1 }
0x1e26   :  { %v1723_v28 = vadd.f32 %v2356_v57, %v1722_v27  ;;  %v2173_v29 = vpop.f32.mrb[57].mxu1 }
0x1e27   :  { %v1725_v31 = vpop.f32.mrb[58].mxu1 }
0x1e28   :  { %2212 = vtanh.f32 %v1723_v28  ;;  %v2174_v32 = vpop.f32.mrb[59].mxu1 }
0x1e32   :  { %v2213_v48 = vpop.eup %2212 }
0x1e33   :  { %v1729_v33 = vmul.f32 %v2213_v48, %v1865_v0 }
0x1e35   :  { %1735 = vrot.lane.b32.xlu1 %v1729_v33, %s2218_s27  ;;  %1731 = vrot.lane.b32.xlu0 %v1729_v33, %s2217_s26 }
0x1e39   :  { %1739 = vrot.lane.b32.xlu0 %v1729_v33, %s2216_s25 }
0x1ea7   :  { %v1732_v57 = vpop.permute.xlu0 %1731  ;;  %v1736_v38 = vpop.permute.xlu1 %1735 }
0x1ea8   :  { %v1734_v37 = vadd.f32 %v1732_v57, %v1729_v33 }
0x1eaa   :  { %v1738_v39 = vadd.f32 %v1736_v38, %v1734_v37 }
0x1eab   :  { %v1740_v40 = vpop.permute.xlu0 %1739 }
0x1eac   :  { %v1742_v41 = vadd.f32 %v1740_v40, %v1738_v39 }
0x1eae   :  { %v1743_v42 = vadd.f32 %v1742_v41, %v1576_v1 }
0x1eb0   :  { %v1744_v43 = vmul.f32 0.5, %v1743_v42 }
0x1eb2   :  { %v1745_v44 = vmul.f32 0.5, %v1744_v43 }
0x1eb4   :  { %v1746_v45 = vadd.f32 %v1745_v44, %v1580_v5 }
0x1eb6   :  { %v1749_v49 = vpack.c.bf16 %v1746_v45, %v1746_v45 }
0x1eb8   :  { %2178 = vmatmul.mubr.msk.bf16.vlgmr.msra.gmra.mrb[60].mxu0 %vm223_vm6, %v1749_v49 }
0x1f8b   :  { %v1798_v51 = vpop.f32.mrb[60].mxu0 }
0x1f8c   :  { %v1799_v52 = vadd.f32 %v1870_v50, %v1798_v51  ;;  %v2179_v53 = vpop.f32.mrb[61].mxu0 }
0x1f8d   :  { %v1801_v18 = vpop.f32.mrb[62].mxu0 }
0x1f8e   :  { %1804 = vst [vmem:[%s2678_s4] sm:$0x3] %v1799_v52  ;;  %v2180_v54 = vpop.f32.mrb[63].mxu0 }

</bundles_post_ra>
